<compile_context>
chip_gen: v5e
topology: v5e:2x2
jax: 0.10.0
libtpu: 0.0.40
codegen_flags: <defaults>
</compile_context>

<pallas_src>
import jax
import jax.numpy as jnp
from jax.experimental import pallas as pl
from jax.experimental.pallas import tpu as pltpu


def swem_kernel(in1_ref, in2_ref, emb_ref,
                w1b_ref, b1_ref,
                w2_ref, b2_ref,
                w3_ref, b3_ref,
                w4_ref, b4_ref,
                w5_ref, b5_ref,
                out_ref,
                mean_ref):
    B, L = in1_ref.shape
    inv_L = 1.0 / L

    # --- fused embedding gather + mean, entirely in VMEM --------------------
    # Token ids come from SMEM; each needed row is a dynamic-slice load from
    # the VMEM-resident table (no per-token HBM DMA descriptors). Only the
    # mean branch of the reference model is live (max_1 - max_2 == 0), so we
    # accumulate the row difference directly: one reduce, one (B, D) result.
    for b in range(B):
        acc = None
        for l in range(L):
            t1 = in1_ref[b, l]
            t2 = in2_ref[b, l]
            d = emb_ref[pl.ds(t1, 1), :] - emb_ref[pl.ds(t2, 1), :]
            acc = d if acc is None else acc + d
        mean_ref[pl.ds(b, 1), :] = acc * inv_L
    mean_diff = mean_ref[...]                            # (B, D) f32

    def leaky(x):                       # LeakyReLU(negative_slope=10), faithful
        return jnp.where(x >= 0, x, 10.0 * x)

    def dense(x, w_ref, b_ref):         # bf16 weights/inputs, f32 MXU accumulate
        return jnp.dot(x.astype(jnp.bfloat16), w_ref[...],
                       preferred_element_type=jnp.float32) + b_ref[...]

    # --- MLP -----------------------------------------------------------------
    # First linear (600 -> 600): [0 | mean_diff] @ W1^T == mean_diff @ W1^T[D:]
    h = leaky(dense(mean_diff, w1b_ref, b1_ref))
    h = leaky(dense(h, w2_ref, b2_ref))
    h = leaky(dense(h, w3_ref, b3_ref))
    h = leaky(dense(h, w4_ref, b4_ref))
    out = dense(h, w5_ref, b5_ref)
    out_ref[...] = out.astype(out_ref.dtype)


def prepare_kernel_params(params):
    """One-time packing of parameters for the kernel (hoisted off the call path).

    PyTorch nn.Linear weights are (out, in) and applied as x @ W^T; we transpose
    to (in, out), slice the live half of W1 (the half multiplying the max-pool
    difference is dead since that difference is identically zero), cast weights
    to bf16 and reshape biases to (1, N) f32.
    """
    D = params["embedding"].shape[1]

    def pack_w(w):                      # (out, in) -> (in, out), bf16
        return jnp.asarray(w).T.astype(jnp.bfloat16)

    def pack_b(b):
        return jnp.asarray(b).reshape(1, -1).astype(jnp.float32)

    w1_t = jnp.asarray(params["w1"]).T  # (in=600, out=600)
    return {
        "embedding": params["embedding"].astype(jnp.float32),
        "w1b": w1_t[D:].astype(jnp.bfloat16),   # rows [:D] multiply exact zeros
        "b1": pack_b(params["b1"]),
        "w2": pack_w(params["w2"]), "b2": pack_b(params["b2"]),
        "w3": pack_w(params["w3"]), "b3": pack_b(params["b3"]),
        "w4": pack_w(params["w4"]), "b4": pack_b(params["b4"]),
        "w5": pack_w(params["w5"]), "b5": pack_b(params["b5"]),
    }


def swem_forward(input_1, input_2, kparams):
    B, L = input_1.shape
    D = kparams["embedding"].shape[1]

    vmem = pl.BlockSpec(memory_space=pltpu.MemorySpace.VMEM)
    smem = pl.BlockSpec(memory_space=pltpu.MemorySpace.SMEM)

    args = [
        input_1.astype(jnp.int32), input_2.astype(jnp.int32),
        kparams["embedding"],
        kparams["w1b"], kparams["b1"],
        kparams["w2"], kparams["b2"],
        kparams["w3"], kparams["b3"],
        kparams["w4"], kparams["b4"],
        kparams["w5"], kparams["b5"],
    ]
    in_specs = [smem, smem] + [vmem] * 11

    return pl.pallas_call(
        swem_kernel,
        out_shape=jax.ShapeDtypeStruct((B, 2), jnp.float32),
        in_specs=in_specs,
        out_specs=vmem,
        scratch_shapes=[pltpu.VMEM((B, D), jnp.float32)],   # mean_diff
    )(*args)


def swem_reference(input_1, input_2, params):
    """Pure-JAX f32 mirror of the PyTorch forward (dead max branch included)."""
    emb_table = params["embedding"]
    B, L = input_1.shape
    D = emb_table.shape[1]
    emb1 = jnp.take(emb_table, input_1, axis=0)
    emb2 = jnp.take(emb_table, input_2, axis=0)
    pooled = emb1.reshape(B, D, L)                    # matches PyTorch .view
    max_1 = pooled.max(axis=-1)
    max_2 = pooled.max(axis=-1)                       # bug preserved: same source
    mean_1 = emb1.mean(axis=1)
    mean_2 = emb2.mean(axis=1)
    x = jnp.concatenate([max_1 - max_2, mean_1 - mean_2], axis=1)

    def leaky(v):
        return jnp.where(v >= 0, v, 10.0 * v)

    def dense(v, w, b):                               # PyTorch Linear: x @ W^T + b
        return v @ w.T + b

    x = leaky(dense(x, params["w1"], params["b1"]))
    x = leaky(dense(x, params["w2"], params["b2"]))
    x = leaky(dense(x, params["w3"], params["b3"]))
    x = leaky(dense(x, params["w4"], params["b4"]))
    return dense(x, params["w5"], params["b5"])


def swem_reference_matched(input_1, input_2, kparams):
    """Pure-JAX mirror of the kernel's numerics (bf16 weights/dot inputs, f32 acc)."""
    emb = kparams["embedding"]
    L = input_1.shape[1]
    mean_diff = (jnp.take(emb, input_1, axis=0).sum(axis=1)
                 - jnp.take(emb, input_2, axis=0).sum(axis=1)) * (1.0 / L)

    def leaky(v):
        return jnp.where(v >= 0, v, 10.0 * v)

    def dense(v, w, b):
        return jnp.dot(v.astype(jnp.bfloat16), w,
                       preferred_element_type=jnp.float32) + b

    h = leaky(dense(mean_diff, kparams["w1b"], kparams["b1"]))
    h = leaky(dense(h, kparams["w2"], kparams["b2"]))
    h = leaky(dense(h, kparams["w3"], kparams["b3"]))
    h = leaky(dense(h, kparams["w4"], kparams["b4"]))
    return dense(h, kparams["w5"], kparams["b5"])


def make_params(key, voc_size, voc_dim):
    keys = jax.random.split(key, 11)

    def xavier(k, fan_out, fan_in):                   # PyTorch Linear layout (out, in)
        bound = (6.0 / (fan_in + fan_out)) ** 0.5
        return jax.random.uniform(k, (fan_out, fan_in), jnp.float32, -bound, bound)

    def bias(k, fan_in, n):
        bound = 1.0 / (fan_in ** 0.5)
        return jax.random.uniform(k, (n,), jnp.float32, -bound, bound)

    return {
        "embedding": jax.random.normal(keys[0], (voc_size, voc_dim), jnp.float32),
        "w1": xavier(keys[1], 600, 600), "b1": bias(keys[2], 600, 600),
        "w2": xavier(keys[3], 300, 600), "b2": bias(keys[4], 600, 300),
        "w3": xavier(keys[5], 300, 300), "b3": bias(keys[6], 300, 300),
        "w4": xavier(keys[7], 100, 300), "b4": bias(keys[8], 300, 100),
        "w5": xavier(keys[9], 2, 100),   "b5": bias(keys[10], 100, 2),
    }


if __name__ == "__main__":
    # voc_dim must be 300: the MLP hard-codes an input width of 600 = 2 * voc_dim.
    B, MAX_LENGTH, VOC_SIZE, VOC_DIM = 2, 8, 50, 300

    key = jax.random.PRNGKey(0)
    kp, k1, k2 = jax.random.split(key, 3)
    params = make_params(kp, VOC_SIZE, VOC_DIM)
    input_1 = jax.random.randint(k1, (B, MAX_LENGTH), 0, VOC_SIZE, dtype=jnp.int32)
    input_2 = jax.random.randint(k2, (B, MAX_LENGTH), 0, VOC_SIZE, dtype=jnp.int32)

    # One-time param prep (transpose, W1 live-half slice, bf16 cast, bias reshape).
    kparams = jax.block_until_ready(prepare_kernel_params(params))

    out = jax.block_until_ready(swem_forward(input_1, input_2, kparams))
    assert out.shape == (B, 2), out.shape

    # Tight check against a pure-JAX mirror of the kernel's exact numerics.
    ref_matched = swem_reference_matched(input_1, input_2, kparams)
    assert jnp.allclose(out, ref_matched, rtol=1e-3, atol=1e-2), (out, ref_matched)

    # Loose sanity check against the faithful f32 PyTorch forward
    # (weights are bf16 in the kernel, so only relative agreement is expected).
    ref_f32 = swem_reference(input_1, input_2, params)
    rel_err = jnp.linalg.norm(out - ref_f32) / (jnp.linalg.norm(ref_f32) + 1e-6)
    assert rel_err < 0.1, (rel_err, out, ref_f32)

    print("KERNEL_OK")
</pallas_src>

<mosaic_0001>
module attributes {stable_mosaic.version = 11 : i64} {
  func.func @swem_kernel(%arg0: memref<2x8xi32, #tpu.memory_space<smem>>, %arg1: memref<2x8xi32, #tpu.memory_space<smem>>, %arg2: memref<50x300xf32, #tpu.memory_space<vmem>>, %arg3: memref<300x600xbf16, #tpu.memory_space<vmem>>, %arg4: memref<1x600xf32, #tpu.memory_space<vmem>>, %arg5: memref<600x300xbf16, #tpu.memory_space<vmem>>, %arg6: memref<1x300xf32, #tpu.memory_space<vmem>>, %arg7: memref<300x300xbf16, #tpu.memory_space<vmem>>, %arg8: memref<1x300xf32, #tpu.memory_space<vmem>>, %arg9: memref<300x100xbf16, #tpu.memory_space<vmem>>, %arg10: memref<1x100xf32, #tpu.memory_space<vmem>>, %arg11: memref<100x2xbf16, #tpu.memory_space<vmem>>, %arg12: memref<1x2xf32, #tpu.memory_space<vmem>>, %arg13: memref<2x2xf32, #tpu.memory_space<vmem>>, %arg14: memref<2x300xf32, #tpu.memory_space<vmem>>) attributes {dimension_semantics = [], scalar_prefetch = 0 : i64, scratch_operands = 1 : i64, tpu.core_type = #tpu.core_type<tc>} {
    %c0 = arith.constant 0 : index
    %c0_0 = arith.constant 0 : index
    %0 = memref.load %arg0[%c0, %c0_0] : memref<2x8xi32, #tpu.memory_space<smem>>
    %c0_1 = arith.constant 0 : index
    %c0_2 = arith.constant 0 : index
    %1 = memref.load %arg1[%c0_1, %c0_2] : memref<2x8xi32, #tpu.memory_space<smem>>
    %2 = arith.index_cast %0 : i32 to index
    %c0_3 = arith.constant 0 : index
    %3 = vector.load %arg2[%2, %c0_3] : memref<50x300xf32, #tpu.memory_space<vmem>>, vector<1x300xf32>
    %4 = arith.index_cast %1 : i32 to index
    %c0_4 = arith.constant 0 : index
    %5 = vector.load %arg2[%4, %c0_4] : memref<50x300xf32, #tpu.memory_space<vmem>>, vector<1x300xf32>
    %6 = arith.subf %3, %5 : vector<1x300xf32>
    %c0_5 = arith.constant 0 : index
    %c1 = arith.constant 1 : index
    %7 = memref.load %arg0[%c0_5, %c1] : memref<2x8xi32, #tpu.memory_space<smem>>
    %c0_6 = arith.constant 0 : index
    %c1_7 = arith.constant 1 : index
    %8 = memref.load %arg1[%c0_6, %c1_7] : memref<2x8xi32, #tpu.memory_space<smem>>
    %9 = arith.index_cast %7 : i32 to index
    %c0_8 = arith.constant 0 : index
    %10 = vector.load %arg2[%9, %c0_8] : memref<50x300xf32, #tpu.memory_space<vmem>>, vector<1x300xf32>
    %11 = arith.index_cast %8 : i32 to index
    %c0_9 = arith.constant 0 : index
    %12 = vector.load %arg2[%11, %c0_9] : memref<50x300xf32, #tpu.memory_space<vmem>>, vector<1x300xf32>
    %13 = arith.subf %10, %12 : vector<1x300xf32>
    %14 = arith.addf %6, %13 : vector<1x300xf32>
    %c0_10 = arith.constant 0 : index
    %c2 = arith.constant 2 : index
    %15 = memref.load %arg0[%c0_10, %c2] : memref<2x8xi32, #tpu.memory_space<smem>>
    %c0_11 = arith.constant 0 : index
    %c2_12 = arith.constant 2 : index
    %16 = memref.load %arg1[%c0_11, %c2_12] : memref<2x8xi32, #tpu.memory_space<smem>>
    %17 = arith.index_cast %15 : i32 to index
    %c0_13 = arith.constant 0 : index
    %18 = vector.load %arg2[%17, %c0_13] : memref<50x300xf32, #tpu.memory_space<vmem>>, vector<1x300xf32>
    %19 = arith.index_cast %16 : i32 to index
    %c0_14 = arith.constant 0 : index
    %20 = vector.load %arg2[%19, %c0_14] : memref<50x300xf32, #tpu.memory_space<vmem>>, vector<1x300xf32>
    %21 = arith.subf %18, %20 : vector<1x300xf32>
    %22 = arith.addf %14, %21 : vector<1x300xf32>
    %c0_15 = arith.constant 0 : index
    %c3 = arith.constant 3 : index
    %23 = memref.load %arg0[%c0_15, %c3] : memref<2x8xi32, #tpu.memory_space<smem>>
    %c0_16 = arith.constant 0 : index
    %c3_17 = arith.constant 3 : index
    %24 = memref.load %arg1[%c0_16, %c3_17] : memref<2x8xi32, #tpu.memory_space<smem>>
    %25 = arith.index_cast %23 : i32 to index
    %c0_18 = arith.constant 0 : index
    %26 = vector.load %arg2[%25, %c0_18] : memref<50x300xf32, #tpu.memory_space<vmem>>, vector<1x300xf32>
    %27 = arith.index_cast %24 : i32 to index
    %c0_19 = arith.constant 0 : index
    %28 = vector.load %arg2[%27, %c0_19] : memref<50x300xf32, #tpu.memory_space<vmem>>, vector<1x300xf32>
    %29 = arith.subf %26, %28 : vector<1x300xf32>
    %30 = arith.addf %22, %29 : vector<1x300xf32>
    %c0_20 = arith.constant 0 : index
    %c4 = arith.constant 4 : index
    %31 = memref.load %arg0[%c0_20, %c4] : memref<2x8xi32, #tpu.memory_space<smem>>
    %c0_21 = arith.constant 0 : index
    %c4_22 = arith.constant 4 : index
    %32 = memref.load %arg1[%c0_21, %c4_22] : memref<2x8xi32, #tpu.memory_space<smem>>
    %33 = arith.index_cast %31 : i32 to index
    %c0_23 = arith.constant 0 : index
    %34 = vector.load %arg2[%33, %c0_23] : memref<50x300xf32, #tpu.memory_space<vmem>>, vector<1x300xf32>
    %35 = arith.index_cast %32 : i32 to index
    %c0_24 = arith.constant 0 : index
    %36 = vector.load %arg2[%35, %c0_24] : memref<50x300xf32, #tpu.memory_space<vmem>>, vector<1x300xf32>
    %37 = arith.subf %34, %36 : vector<1x300xf32>
    %38 = arith.addf %30, %37 : vector<1x300xf32>
    %c0_25 = arith.constant 0 : index
    %c5 = arith.constant 5 : index
    %39 = memref.load %arg0[%c0_25, %c5] : memref<2x8xi32, #tpu.memory_space<smem>>
    %c0_26 = arith.constant 0 : index
    %c5_27 = arith.constant 5 : index
    %40 = memref.load %arg1[%c0_26, %c5_27] : memref<2x8xi32, #tpu.memory_space<smem>>
    %41 = arith.index_cast %39 : i32 to index
    %c0_28 = arith.constant 0 : index
    %42 = vector.load %arg2[%41, %c0_28] : memref<50x300xf32, #tpu.memory_space<vmem>>, vector<1x300xf32>
    %43 = arith.index_cast %40 : i32 to index
    %c0_29 = arith.constant 0 : index
    %44 = vector.load %arg2[%43, %c0_29] : memref<50x300xf32, #tpu.memory_space<vmem>>, vector<1x300xf32>
    %45 = arith.subf %42, %44 : vector<1x300xf32>
    %46 = arith.addf %38, %45 : vector<1x300xf32>
    %c0_30 = arith.constant 0 : index
    %c6 = arith.constant 6 : index
    %47 = memref.load %arg0[%c0_30, %c6] : memref<2x8xi32, #tpu.memory_space<smem>>
    %c0_31 = arith.constant 0 : index
    %c6_32 = arith.constant 6 : index
    %48 = memref.load %arg1[%c0_31, %c6_32] : memref<2x8xi32, #tpu.memory_space<smem>>
    %49 = arith.index_cast %47 : i32 to index
    %c0_33 = arith.constant 0 : index
    %50 = vector.load %arg2[%49, %c0_33] : memref<50x300xf32, #tpu.memory_space<vmem>>, vector<1x300xf32>
    %51 = arith.index_cast %48 : i32 to index
    %c0_34 = arith.constant 0 : index
    %52 = vector.load %arg2[%51, %c0_34] : memref<50x300xf32, #tpu.memory_space<vmem>>, vector<1x300xf32>
    %53 = arith.subf %50, %52 : vector<1x300xf32>
    %54 = arith.addf %46, %53 : vector<1x300xf32>
    %c0_35 = arith.constant 0 : index
    %c7 = arith.constant 7 : index
    %55 = memref.load %arg0[%c0_35, %c7] : memref<2x8xi32, #tpu.memory_space<smem>>
    %c0_36 = arith.constant 0 : index
    %c7_37 = arith.constant 7 : index
    %56 = memref.load %arg1[%c0_36, %c7_37] : memref<2x8xi32, #tpu.memory_space<smem>>
    %57 = arith.index_cast %55 : i32 to index
    %c0_38 = arith.constant 0 : index
    %58 = vector.load %arg2[%57, %c0_38] : memref<50x300xf32, #tpu.memory_space<vmem>>, vector<1x300xf32>
    %59 = arith.index_cast %56 : i32 to index
    %c0_39 = arith.constant 0 : index
    %60 = vector.load %arg2[%59, %c0_39] : memref<50x300xf32, #tpu.memory_space<vmem>>, vector<1x300xf32>
    %61 = arith.subf %58, %60 : vector<1x300xf32>
    %62 = arith.addf %54, %61 : vector<1x300xf32>
    %cst = arith.constant 1.250000e-01 : f32
    %63 = vector.broadcast %cst : f32 to vector<1x300xf32>
    %64 = arith.mulf %62, %63 : vector<1x300xf32>
    %c0_40 = arith.constant 0 : index
    %c0_41 = arith.constant 0 : index
    %65 = vector.load %arg14[%c0_40, %c0_41] : memref<2x300xf32, #tpu.memory_space<vmem>>, vector<1x300xf32>
    tpu.vector_store %arg14[%c0_40, %c0_41], %64 {strides = array<i32>} : memref<2x300xf32, #tpu.memory_space<vmem>>, vector<1x300xf32>,
    %c1_42 = arith.constant 1 : index
    %c0_43 = arith.constant 0 : index
    %66 = memref.load %arg0[%c1_42, %c0_43] : memref<2x8xi32, #tpu.memory_space<smem>>
    %c1_44 = arith.constant 1 : index
    %c0_45 = arith.constant 0 : index
    %67 = memref.load %arg1[%c1_44, %c0_45] : memref<2x8xi32, #tpu.memory_space<smem>>
    %68 = arith.index_cast %66 : i32 to index
    %c0_46 = arith.constant 0 : index
    %69 = vector.load %arg2[%68, %c0_46] : memref<50x300xf32, #tpu.memory_space<vmem>>, vector<1x300xf32>
    %70 = arith.index_cast %67 : i32 to index
    %c0_47 = arith.constant 0 : index
    %71 = vector.load %arg2[%70, %c0_47] : memref<50x300xf32, #tpu.memory_space<vmem>>, vector<1x300xf32>
    %72 = arith.subf %69, %71 : vector<1x300xf32>
    %c1_48 = arith.constant 1 : index
    %c1_49 = arith.constant 1 : index
    %73 = memref.load %arg0[%c1_48, %c1_49] : memref<2x8xi32, #tpu.memory_space<smem>>
    %c1_50 = arith.constant 1 : index
    %c1_51 = arith.constant 1 : index
    %74 = memref.load %arg1[%c1_50, %c1_51] : memref<2x8xi32, #tpu.memory_space<smem>>
    %75 = arith.index_cast %73 : i32 to index
    %c0_52 = arith.constant 0 : index
    %76 = vector.load %arg2[%75, %c0_52] : memref<50x300xf32, #tpu.memory_space<vmem>>, vector<1x300xf32>
    %77 = arith.index_cast %74 : i32 to index
    %c0_53 = arith.constant 0 : index
    %78 = vector.load %arg2[%77, %c0_53] : memref<50x300xf32, #tpu.memory_space<vmem>>, vector<1x300xf32>
    %79 = arith.subf %76, %78 : vector<1x300xf32>
    %80 = arith.addf %72, %79 : vector<1x300xf32>
    %c1_54 = arith.constant 1 : index
    %c2_55 = arith.constant 2 : index
    %81 = memref.load %arg0[%c1_54, %c2_55] : memref<2x8xi32, #tpu.memory_space<smem>>
    %c1_56 = arith.constant 1 : index
    %c2_57 = arith.constant 2 : index
    %82 = memref.load %arg1[%c1_56, %c2_57] : memref<2x8xi32, #tpu.memory_space<smem>>
    %83 = arith.index_cast %81 : i32 to index
    %c0_58 = arith.constant 0 : index
    %84 = vector.load %arg2[%83, %c0_58] : memref<50x300xf32, #tpu.memory_space<vmem>>, vector<1x300xf32>
    %85 = arith.index_cast %82 : i32 to index
    %c0_59 = arith.constant 0 : index
    %86 = vector.load %arg2[%85, %c0_59] : memref<50x300xf32, #tpu.memory_space<vmem>>, vector<1x300xf32>
    %87 = arith.subf %84, %86 : vector<1x300xf32>
    %88 = arith.addf %80, %87 : vector<1x300xf32>
    %c1_60 = arith.constant 1 : index
    %c3_61 = arith.constant 3 : index
    %89 = memref.load %arg0[%c1_60, %c3_61] : memref<2x8xi32, #tpu.memory_space<smem>>
    %c1_62 = arith.constant 1 : index
    %c3_63 = arith.constant 3 : index
    %90 = memref.load %arg1[%c1_62, %c3_63] : memref<2x8xi32, #tpu.memory_space<smem>>
    %91 = arith.index_cast %89 : i32 to index
    %c0_64 = arith.constant 0 : index
    %92 = vector.load %arg2[%91, %c0_64] : memref<50x300xf32, #tpu.memory_space<vmem>>, vector<1x300xf32>
    %93 = arith.index_cast %90 : i32 to index
    %c0_65 = arith.constant 0 : index
    %94 = vector.load %arg2[%93, %c0_65] : memref<50x300xf32, #tpu.memory_space<vmem>>, vector<1x300xf32>
    %95 = arith.subf %92, %94 : vector<1x300xf32>
    %96 = arith.addf %88, %95 : vector<1x300xf32>
    %c1_66 = arith.constant 1 : index
    %c4_67 = arith.constant 4 : index
    %97 = memref.load %arg0[%c1_66, %c4_67] : memref<2x8xi32, #tpu.memory_space<smem>>
    %c1_68 = arith.constant 1 : index
    %c4_69 = arith.constant 4 : index
    %98 = memref.load %arg1[%c1_68, %c4_69] : memref<2x8xi32, #tpu.memory_space<smem>>
    %99 = arith.index_cast %97 : i32 to index
    %c0_70 = arith.constant 0 : index
    %100 = vector.load %arg2[%99, %c0_70] : memref<50x300xf32, #tpu.memory_space<vmem>>, vector<1x300xf32>
    %101 = arith.index_cast %98 : i32 to index
    %c0_71 = arith.constant 0 : index
    %102 = vector.load %arg2[%101, %c0_71] : memref<50x300xf32, #tpu.memory_space<vmem>>, vector<1x300xf32>
    %103 = arith.subf %100, %102 : vector<1x300xf32>
    %104 = arith.addf %96, %103 : vector<1x300xf32>
    %c1_72 = arith.constant 1 : index
    %c5_73 = arith.constant 5 : index
    %105 = memref.load %arg0[%c1_72, %c5_73] : memref<2x8xi32, #tpu.memory_space<smem>>
    %c1_74 = arith.constant 1 : index
    %c5_75 = arith.constant 5 : index
    %106 = memref.load %arg1[%c1_74, %c5_75] : memref<2x8xi32, #tpu.memory_space<smem>>
    %107 = arith.index_cast %105 : i32 to index
    %c0_76 = arith.constant 0 : index
    %108 = vector.load %arg2[%107, %c0_76] : memref<50x300xf32, #tpu.memory_space<vmem>>, vector<1x300xf32>
    %109 = arith.index_cast %106 : i32 to index
    %c0_77 = arith.constant 0 : index
    %110 = vector.load %arg2[%109, %c0_77] : memref<50x300xf32, #tpu.memory_space<vmem>>, vector<1x300xf32>
    %111 = arith.subf %108, %110 : vector<1x300xf32>
    %112 = arith.addf %104, %111 : vector<1x300xf32>
    %c1_78 = arith.constant 1 : index
    %c6_79 = arith.constant 6 : index
    %113 = memref.load %arg0[%c1_78, %c6_79] : memref<2x8xi32, #tpu.memory_space<smem>>
    %c1_80 = arith.constant 1 : index
    %c6_81 = arith.constant 6 : index
    %114 = memref.load %arg1[%c1_80, %c6_81] : memref<2x8xi32, #tpu.memory_space<smem>>
    %115 = arith.index_cast %113 : i32 to index
    %c0_82 = arith.constant 0 : index
    %116 = vector.load %arg2[%115, %c0_82] : memref<50x300xf32, #tpu.memory_space<vmem>>, vector<1x300xf32>
    %117 = arith.index_cast %114 : i32 to index
    %c0_83 = arith.constant 0 : index
    %118 = vector.load %arg2[%117, %c0_83] : memref<50x300xf32, #tpu.memory_space<vmem>>, vector<1x300xf32>
    %119 = arith.subf %116, %118 : vector<1x300xf32>
    %120 = arith.addf %112, %119 : vector<1x300xf32>
    %c1_84 = arith.constant 1 : index
    %c7_85 = arith.constant 7 : index
    %121 = memref.load %arg0[%c1_84, %c7_85] : memref<2x8xi32, #tpu.memory_space<smem>>
    %c1_86 = arith.constant 1 : index
    %c7_87 = arith.constant 7 : index
    %122 = memref.load %arg1[%c1_86, %c7_87] : memref<2x8xi32, #tpu.memory_space<smem>>
    %123 = arith.index_cast %121 : i32 to index
    %c0_88 = arith.constant 0 : index
    %124 = vector.load %arg2[%123, %c0_88] : memref<50x300xf32, #tpu.memory_space<vmem>>, vector<1x300xf32>
    %125 = arith.index_cast %122 : i32 to index
    %c0_89 = arith.constant 0 : index
    %126 = vector.load %arg2[%125, %c0_89] : memref<50x300xf32, #tpu.memory_space<vmem>>, vector<1x300xf32>
    %127 = arith.subf %124, %126 : vector<1x300xf32>
    %128 = arith.addf %120, %127 : vector<1x300xf32>
    %cst_90 = arith.constant 1.250000e-01 : f32
    %129 = vector.broadcast %cst_90 : f32 to vector<1x300xf32>
    %130 = arith.mulf %128, %129 : vector<1x300xf32>
    %c1_91 = arith.constant 1 : index
    %c0_92 = arith.constant 0 : index
    %131 = vector.load %arg14[%c1_91, %c0_92] : memref<2x300xf32, #tpu.memory_space<vmem>>, vector<1x300xf32>
    tpu.vector_store %arg14[%c1_91, %c0_92], %130 {strides = array<i32>} : memref<2x300xf32, #tpu.memory_space<vmem>>, vector<1x300xf32>,
    %c0_93 = arith.constant 0 : index
    %c0_94 = arith.constant 0 : index
    %132 = vector.load %arg14[%c0_93, %c0_94] : memref<2x300xf32, #tpu.memory_space<vmem>>, vector<2x300xf32>
    %133 = arith.truncf %132 : vector<2x300xf32> to vector<2x300xbf16>
    %c0_95 = arith.constant 0 : index
    %c0_96 = arith.constant 0 : index
    %134 = vector.load %arg3[%c0_95, %c0_96] : memref<300x600xbf16, #tpu.memory_space<vmem>>, vector<300x600xbf16>
    %cst_97 = arith.constant dense<0.000000e+00> : vector<2x600xf32>
    %135 = tpu.matmul %133, %134, %cst_97 {dimension_numbers = #tpu.dot_dimension_numbers<[1], [0], [0], [1], [0, 0, 1, 1], [], []>} : vector<2x300xbf16>, vector<300x600xbf16>, vector<2x600xf32> -> vector<2x600xf32>
    %c0_98 = arith.constant 0 : index
    %c0_99 = arith.constant 0 : index
    %136 = vector.load %arg4[%c0_98, %c0_99] : memref<1x600xf32, #tpu.memory_space<vmem>>, vector<1x600xf32>
    %137 = vector.broadcast %136 : vector<1x600xf32> to vector<2x600xf32>
    %138 = arith.addf %135, %137 : vector<2x600xf32>
    %cst_100 = arith.constant 0.000000e+00 : f32
    %139 = vector.broadcast %cst_100 : f32 to vector<2x600xf32>
    %140 = arith.cmpf oge, %138, %139 : vector<2x600xf32>
    %cst_101 = arith.constant 1.000000e+01 : f32
    %141 = vector.broadcast %cst_101 : f32 to vector<2x600xf32>
    %142 = arith.mulf %141, %138 : vector<2x600xf32>
    %143 = arith.select %140, %138, %142 : vector<2x600xi1>, vector<2x600xf32>
    %144 = arith.truncf %143 : vector<2x600xf32> to vector<2x600xbf16>
    %c0_102 = arith.constant 0 : index
    %c0_103 = arith.constant 0 : index
    %145 = vector.load %arg5[%c0_102, %c0_103] : memref<600x300xbf16, #tpu.memory_space<vmem>>, vector<600x300xbf16>
    %cst_104 = arith.constant dense<0.000000e+00> : vector<2x300xf32>
    %146 = tpu.matmul %144, %145, %cst_104 {dimension_numbers = #tpu.dot_dimension_numbers<[1], [0], [0], [1], [0, 0, 1, 1], [], []>} : vector<2x600xbf16>, vector<600x300xbf16>, vector<2x300xf32> -> vector<2x300xf32>
    %c0_105 = arith.constant 0 : index
    %c0_106 = arith.constant 0 : index
    %147 = vector.load %arg6[%c0_105, %c0_106] : memref<1x300xf32, #tpu.memory_space<vmem>>, vector<1x300xf32>
    %148 = vector.broadcast %147 : vector<1x300xf32> to vector<2x300xf32>
    %149 = arith.addf %146, %148 : vector<2x300xf32>
    %cst_107 = arith.constant 0.000000e+00 : f32
    %150 = vector.broadcast %cst_107 : f32 to vector<2x300xf32>
    %151 = arith.cmpf oge, %149, %150 : vector<2x300xf32>
    %cst_108 = arith.constant 1.000000e+01 : f32
    %152 = vector.broadcast %cst_108 : f32 to vector<2x300xf32>
    %153 = arith.mulf %152, %149 : vector<2x300xf32>
    %154 = arith.select %151, %149, %153 : vector<2x300xi1>, vector<2x300xf32>
    %155 = arith.truncf %154 : vector<2x300xf32> to vector<2x300xbf16>
    %c0_109 = arith.constant 0 : index
    %c0_110 = arith.constant 0 : index
    %156 = vector.load %arg7[%c0_109, %c0_110] : memref<300x300xbf16, #tpu.memory_space<vmem>>, vector<300x300xbf16>
    %cst_111 = arith.constant dense<0.000000e+00> : vector<2x300xf32>
    %157 = tpu.matmul %155, %156, %cst_111 {dimension_numbers = #tpu.dot_dimension_numbers<[1], [0], [0], [1], [0, 0, 1, 1], [], []>} : vector<2x300xbf16>, vector<300x300xbf16>, vector<2x300xf32> -> vector<2x300xf32>
    %c0_112 = arith.constant 0 : index
    %c0_113 = arith.constant 0 : index
    %158 = vector.load %arg8[%c0_112, %c0_113] : memref<1x300xf32, #tpu.memory_space<vmem>>, vector<1x300xf32>
    %159 = vector.broadcast %158 : vector<1x300xf32> to vector<2x300xf32>
    %160 = arith.addf %157, %159 : vector<2x300xf32>
    %cst_114 = arith.constant 0.000000e+00 : f32
    %161 = vector.broadcast %cst_114 : f32 to vector<2x300xf32>
    %162 = arith.cmpf oge, %160, %161 : vector<2x300xf32>
    %cst_115 = arith.constant 1.000000e+01 : f32
    %163 = vector.broadcast %cst_115 : f32 to vector<2x300xf32>
    %164 = arith.mulf %163, %160 : vector<2x300xf32>
    %165 = arith.select %162, %160, %164 : vector<2x300xi1>, vector<2x300xf32>
    %166 = arith.truncf %165 : vector<2x300xf32> to vector<2x300xbf16>
    %c0_116 = arith.constant 0 : index
    %c0_117 = arith.constant 0 : index
    %167 = vector.load %arg9[%c0_116, %c0_117] : memref<300x100xbf16, #tpu.memory_space<vmem>>, vector<300x100xbf16>
    %cst_118 = arith.constant dense<0.000000e+00> : vector<2x100xf32>
    %168 = tpu.matmul %166, %167, %cst_118 {dimension_numbers = #tpu.dot_dimension_numbers<[1], [0], [0], [1], [0, 0, 1, 1], [], []>} : vector<2x300xbf16>, vector<300x100xbf16>, vector<2x100xf32> -> vector<2x100xf32>
    %c0_119 = arith.constant 0 : index
    %c0_120 = arith.constant 0 : index
    %169 = vector.load %arg10[%c0_119, %c0_120] : memref<1x100xf32, #tpu.memory_space<vmem>>, vector<1x100xf32>
    %170 = vector.broadcast %169 : vector<1x100xf32> to vector<2x100xf32>
    %171 = arith.addf %168, %170 : vector<2x100xf32>
    %cst_121 = arith.constant 0.000000e+00 : f32
    %172 = vector.broadcast %cst_121 : f32 to vector<2x100xf32>
    %173 = arith.cmpf oge, %171, %172 : vector<2x100xf32>
    %cst_122 = arith.constant 1.000000e+01 : f32
    %174 = vector.broadcast %cst_122 : f32 to vector<2x100xf32>
    %175 = arith.mulf %174, %171 : vector<2x100xf32>
    %176 = arith.select %173, %171, %175 : vector<2x100xi1>, vector<2x100xf32>
    %177 = arith.truncf %176 : vector<2x100xf32> to vector<2x100xbf16>
    %c0_123 = arith.constant 0 : index
    %c0_124 = arith.constant 0 : index
    %178 = vector.load %arg11[%c0_123, %c0_124] : memref<100x2xbf16, #tpu.memory_space<vmem>>, vector<100x2xbf16>
    %cst_125 = arith.constant dense<0.000000e+00> : vector<2x2xf32>
    %179 = tpu.matmul %177, %178, %cst_125 {dimension_numbers = #tpu.dot_dimension_numbers<[1], [0], [0], [1], [0, 0, 1, 1], [], []>} : vector<2x100xbf16>, vector<100x2xbf16>, vector<2x2xf32> -> vector<2x2xf32>
    %c0_126 = arith.constant 0 : index
    %c0_127 = arith.constant 0 : index
    %180 = vector.load %arg12[%c0_126, %c0_127] : memref<1x2xf32, #tpu.memory_space<vmem>>, vector<1x2xf32>
    %181 = vector.broadcast %180 : vector<1x2xf32> to vector<2x2xf32>
    %182 = arith.addf %179, %181 : vector<2x2xf32>
    %c0_128 = arith.constant 0 : index
    %c0_129 = arith.constant 0 : index
    %183 = vector.load %arg13[%c0_128, %c0_129] : memref<2x2xf32, #tpu.memory_space<vmem>>, vector<2x2xf32>
    tpu.vector_store %arg13[%c0_128, %c0_129], %182 {strides = array<i32>} : memref<2x2xf32, #tpu.memory_space<vmem>>, vector<2x2xf32>,
    return
  }
}

</mosaic_0001>

<bundles_post_ra>
// kernel: tpu_custom_call.1
= control target key start
LH: loop header
LB: loop body
LE: loop exit
PB: predicated region body
PF: predicated region fallthrough
CT: control target
= control target key end

     0   :  { %s6854_s0 = inlined_call_operand.vmem [shape: s32[2,8], index: 0, kind: input, shape index: {}]   ;;  %s6855_s1 = inlined_call_operand.vmem [shape: s32[2,8], index: 1, kind: input, shape index: {}]   ;;  %s6856_s2 = inlined_call_operand.vmem [shape: f32[50,300], index: 2, kind: input, shape index: {}]   ;;  %s6857_s3 = inlined_call_operand.vmem [shape: bf16[300,600], index: 3, kind: input, shape index: {}]   ;;  %s6858_s4 = inlined_call_operand.vmem [shape: f32[1,600], index: 4, kind: input, shape index: {}]   ;;  %s6859_s5 = inlined_call_operand.vmem [shape: bf16[600,300], index: 5, kind: input, shape index: {}]   ;;  %s6860_s6 = inlined_call_operand.vmem [shape: f32[1,300], index: 6, kind: input, shape index: {}]   ;;  %s6861_s7 = inlined_call_operand.vmem [shape: bf16[300,300], index: 7, kind: input, shape index: {}]   ;;  %s6862_s8 = inlined_call_operand.vmem [shape: f32[1,300], index: 8, kind: input, shape index: {}]   ;;  %s6863_s9 = inlined_call_operand.vmem [shape: bf16[300,100], index: 9, kind: input, shape index: {}]   ;;  %s6864_s10 = inlined_call_operand.vmem [shape: f32[1,100], index: 10, kind: input, shape index: {}]   ;;  %s6865_s11 = inlined_call_operand.vmem [shape: bf16[100,2], index: 11, kind: input, shape index: {}]   ;;  %s6866_s12 = inlined_call_operand.vmem [shape: f32[1,2], index: 12, kind: input, shape index: {}]   ;;  %s6867_s13 = inlined_call_operand.hbm [shape: f32[2,2], index: 13, kind: output, shape index: {}]  }
   0x1   :  { %6871 = sst [smem:[#allocation12_spill]] %s6860_s6 }
   0x2   :  { %6872 = sst [smem:[#allocation13_spill]] %s6861_s7 }
   0x3   :  { %6873 = sst [smem:[#allocation14_spill]] %s6862_s8 }
   0x4   :  { %6874 = sst [smem:[#allocation15_spill]] %s6863_s9 }
   0x5   :  { %6875 = sst [smem:[#allocation16_spill]] %s6864_s10 }
   0x6   :  { %6876 = sst [smem:[#allocation17_spill]] %s6865_s11 }
   0x7   :  { %6877 = sst [smem:[#allocation18_spill]] %s6866_s12 }
   0x8   :  { %6878 = sst [smem:[#allocation19_spill]] %s6867_s13 }
   0x9   :  { %18 = vsyncpa [#allocation5], 0 }
   0xa   :  { %19 = vsyncpa [#allocation7], 0 }
   0xb   :  { %20 = vsyncpa [#allocation4], 0  ;;  %s26_s27 = sshll.u32 %s6854_s0, 4  ;;  %s35_s30 = sshll.u32 %s6855_s1, 4  ;;  %s27_s27 = int_to_ptr.vmem [resolvable:$true] %s26_s27  ;;  %s36_s30 = int_to_ptr.vmem [resolvable:$true] %s35_s30 }
   0xc   :  { %s4768_s14 = smov [#allocation3]   ;;  %s4769_s15 = smov [#allocation6]  }
   0xd   :  { %29 = dma.vmem_to_smem %s27_s27, 32, %s4768_s14, [#allocation5]  }
   0xe   :  { %38 = dma.vmem_to_smem %s36_s30, 32, %s4769_s15, [#allocation7]  }
   0xf   :  { %4762 = dma.done.wait [#allocation5], 32  }
  0x10   :  { %4763 = vsyncadd [#allocation5], 4294967264 }
  0x11   :  { %4764 = dma.done.wait [#allocation7], 32  }
  0x12   :  { %4765 = vsyncadd [#allocation7], 4294967264 }
  0x13   :  { %69 = sfence }
  0x14   :  { %v4456_v0 = vld [vmem:[%s6857_s3 + $0x11c] sm:$0xf]  ;;  %v3400_v1 = vld [vmem:[%s6857_s3 + $0x12c] sm:$0xf0]  ;;  %v4451_v2 = vld [vmem:[%s6857_s3 + $0xf4] sm:$0xf] }
  0x15   :  { %v3403_v3 = vor.u32 %v4456_v0, %v3400_v1  ;;  %v3380_v4 = vld [vmem:[%s6857_s3 + $0x104] sm:$0xf0]  ;;  %v3398_v5 = vld [vmem:[%s6857_s3 + $0x118] sm:$0xf]  ;;  %v4458_v6 = vld [vmem:[%s6857_s3 + $0x128] sm:$0xf0] }
  0x16   :  { %v3399_v7 = vor.u32 %v4458_v6, %v3398_v5  ;;  %v3558_v8 = vld [vmem:[%s6857_s3 + $0x258] sm:$0xf]  ;;  %v4498_v9 = vld [vmem:[%s6857_s3 + $0x268] sm:$0xf0]  ;;  %v3383_v10 = vor.u32 %v4451_v2, %v3380_v4  ;;  %v3378_v13 = vld [vmem:[%s6857_s3 + $0xf0] sm:$0xf] }
  0x17   :  { %1116 = vmatpush.bf16.msra.mxu3 %v3403_v3  ;;  %v3559_v11 = vor.u32 %v4498_v9, %v3558_v8  ;;  %v4446_v12 = vld [vmem:[%s6857_s3 + $0xcc] sm:$0xf]  ;;  %v4453_v14 = vld [vmem:[%s6857_s3 + $0x100] sm:$0xf0]  ;;  %v3360_v15 = vld [vmem:[%s6857_s3 + $0xdc] sm:$0xf0] }
  0x18   :  { %1077 = vmatpush.bf16.msra.mxu0 %v3399_v7  ;;  %v3379_v16 = vor.u32 %v4453_v14, %v3378_v13  ;;  %v3538_v17 = vld [vmem:[%s6857_s3 + $0x230] sm:$0xf]  ;;  %v4493_v18 = vld [vmem:[%s6857_s3 + $0x240] sm:$0xf0]  ;;  %v3358_v20 = vld [vmem:[%s6857_s3 + $0xc8] sm:$0xf]  ;;  %v3363_v25 = vor.u32 %v4446_v12, %v3360_v15 }
  0x19   :  { %1090 = vmatpush.bf16.msra.mxu1 %v3559_v11  ;;  %v3539_v19 = vor.u32 %v4493_v18, %v3538_v17  ;;  %v4448_v21 = vld [vmem:[%s6857_s3 + $0xd8] sm:$0xf0]  ;;  %v3518_v22 = vld [vmem:[%s6857_s3 + $0x208] sm:$0xf]  ;;  %v3618_v24 = vld [vmem:[%s6857_s3 + $0x2d0] sm:$0xf] }
  0x1a   :  { %v4488_v23 = vld [vmem:[%s6857_s3 + $0x218] sm:$0xf0]  ;;  %v4513_v26 = vld [vmem:[%s6857_s3 + $0x2e0] sm:$0x30]  ;;  %vm1061_vm0 = vcmask 1045504   ;;  %v3359_v29 = vor.u32 %v4448_v21, %v3358_v20  ;;  %s5071_s29 = sld [smem:[#allocation3]] }
  0x1b   :  { %1117 = vmatpush.bf16.msra.mxu3 %v3383_v10  ;;  %v4441_v27 = vld [vmem:[%s6857_s3 + $0xa4] sm:$0xf]  ;;  %v3340_v28 = vld [vmem:[%s6857_s3 + $0xb4] sm:$0xf0]  ;;  %v3619_v30 = vor.u32 %v4513_v26, %v3618_v24  ;;  %v3338_v31 = vld [vmem:[%s6857_s3 + $0xa0] sm:$0xf]  ;;  %v3519_v32 = vor.u32 %v4488_v23, %v3518_v22 }
  0x1c   :  { %1078 = vmatpush.bf16.msra.mxu0 %v3379_v16  ;;  %v4443_v33 = vld [vmem:[%s6857_s3 + $0xb0] sm:$0xf0]  ;;  %v3498_v34 = vld [vmem:[%s6857_s3 + $0x1e0] sm:$0xf]  ;;  %v3598_v35 = vld [vmem:[%s6857_s3 + $0x2a8] sm:$0xf]  ;;  %v3343_v39 = vor.u32 %v4441_v27, %v3340_v28 }
  0x1d   :  { %1091 = vmatpush.bf16.msra.mxu1 %v3539_v19  ;;  %v1063_v36 = vsel %vm1061_vm0, %v3619_v30, 0  ;;  %v4483_v37 = vld [vmem:[%s6857_s3 + $0x1f0] sm:$0xf0]  ;;  %v4508_v38 = vld [vmem:[%s6857_s3 + $0x2b8] sm:$0xf0]  ;;  %v3339_v43 = vor.u32 %v4443_v33, %v3338_v31  ;;  %s5073_s30 = sld [smem:[#allocation6]] }
  0x1e   :  { %1108 = vmatpush.bf16.msra.mxu2 %v1063_v36  ;;  %v4436_v40 = vld [vmem:[%s6857_s3 + $0x7c] sm:$0xf]  ;;  %v3599_v41 = vor.u32 %v4508_v38, %v3598_v35  ;;  %v3320_v42 = vld [vmem:[%s6857_s3 + $0x8c] sm:$0xf0]  ;;  %v3318_v44 = vld [vmem:[%s6857_s3 + $0x78] sm:$0xf]  ;;  %v3499_v46 = vor.u32 %v4483_v37, %v3498_v34 }
  0x1f   :  { %1118 = vmatpush.bf16.msra.mxu3 %v3363_v25  ;;  %v3578_v45 = vld [vmem:[%s6857_s3 + $0x280] sm:$0xf]  ;;  %v4438_v47 = vld [vmem:[%s6857_s3 + $0x88] sm:$0xf0]  ;;  %v3478_v48 = vld [vmem:[%s6857_s3 + $0x1b8] sm:$0xf]  ;;  %v3323_v53 = vor.u32 %v4436_v40, %v3320_v42 }
  0x20   :  { %1079 = vmatpush.bf16.msra.mxu0 %v3359_v29  ;;  %v4503_v49 = vld [vmem:[%s6857_s3 + $0x290] sm:$0xf0]  ;;  %v4478_v50 = vld [vmem:[%s6857_s3 + $0x1c8] sm:$0xf0]  ;;  %v4496_v51 = vld [vmem:[%s6857_s3 + $0x25c] sm:$0xf]  ;;  %v3319_v57 = vor.u32 %v4438_v47, %v3318_v44 }
  0x21   :  { %1092 = vmatpush.bf16.msra.mxu1 %v3519_v32  ;;  %v3560_v52 = vld [vmem:[%s6857_s3 + $0x26c] sm:$0xf0]  ;;  %v3579_v54 = vor.u32 %v4503_v49, %v3578_v45  ;;  %v4431_v55 = vld [vmem:[%s6857_s3 + $0x54] sm:$0xf]  ;;  %v3300_v56 = vld [vmem:[%s6857_s3 + $0x64] sm:$0xf0]  ;;  %v3479_v60 = vor.u32 %v4478_v50, %v3478_v48 }
  0x22   :  { %1109 = vmatpush.bf16.msra.mxu2 %v3599_v41  ;;  %v3563_v58 = vor.u32 %v4496_v51, %v3560_v52  ;;  %v3298_v59 = vld [vmem:[%s6857_s3 + $0x50] sm:$0xf]  ;;  %v4433_v61 = vld [vmem:[%s6857_s3 + $0x60] sm:$0xf0]  ;;  %v4491_v62 = vld [vmem:[%s6857_s3 + $0x234] sm:$0xf]  ;;  %v3303_v2 = vor.u32 %v4431_v55, %v3300_v56 }
  0x23   :  { %1119 = vmatpush.bf16.msra.mxu3 %v3343_v39  ;;  %v3540_v63 = vld [vmem:[%s6857_s3 + $0x244] sm:$0xf0]  ;;  %v3458_v0 = vld [vmem:[%s6857_s3 + $0x190] sm:$0xf]  ;;  %v4473_v1 = vld [vmem:[%s6857_s3 + $0x1a0] sm:$0xf0]  ;;  %v3299_v5 = vor.u32 %v4433_v61, %v3298_v59 }
  0x24   :  { %1080 = vmatpush.bf16.msra.mxu0 %v3339_v43  ;;  %v4426_v3 = vld [vmem:[%s6857_s3 + $0x2c] sm:$0xf]  ;;  %v3280_v4 = vld [vmem:[%s6857_s3 + $0x3c] sm:$0xf0]  ;;  %v3543_v6 = vor.u32 %v4491_v62, %v3540_v63  ;;  %v3278_v7 = vld [vmem:[%s6857_s3 + $0x28] sm:$0xf]  ;;  %v3459_v8 = vor.u32 %v4473_v1, %v3458_v0 }
  0x25   :  { %1093 = vmatpush.bf16.msra.mxu1 %v3499_v46  ;;  %v4428_v9 = vld [vmem:[%s6857_s3 + $0x38] sm:$0xf0]  ;;  %v4486_v10 = vld [vmem:[%s6857_s3 + $0x20c] sm:$0xf]  ;;  %v3520_v11 = vld [vmem:[%s6857_s3 + $0x21c] sm:$0xf0]  ;;  %v3283_v15 = vor.u32 %v4426_v3, %v3280_v4 }
  0x26   :  { %1110 = vmatpush.bf16.msra.mxu2 %v3579_v54  ;;  %v3438_v12 = vld [vmem:[%s6857_s3 + $0x168] sm:$0xf]  ;;  %v4468_v13 = vld [vmem:[%s6857_s3 + $0x178] sm:$0xf0]  ;;  %v4511_v14 = vld [vmem:[%s6857_s3 + $0x2d4] sm:$0xf]  ;;  %v3279_v21 = vor.u32 %v4428_v9, %v3278_v7  ;;  %v3523_v22 = vor.u32 %v4486_v10, %v3520_v11 }
  0x27   :  { %1120 = vmatpush.bf16.msra.mxu3 %v3323_v53  ;;  %v4421_v16 = vld [vmem:[%s6857_s3 + $0x4] sm:$0xf]  ;;  %v3620_v17 = vld [vmem:[%s6857_s3 + $0x2e4] sm:$0x30]  ;;  %v3260_v18 = vld [vmem:[%s6857_s3 + $0x14] sm:$0xf0]  ;;  %v3439_v23 = vor.u32 %v4468_v13, %v3438_v12 }
  0x28   :  { %1081 = vmatpush.bf16.msra.mxu0 %v3319_v57  ;;  %v3566_v19 = vld [vmem:[%s6857_s3 + $0x260] sm:$0xf]  ;;  %v4499_v20 = vld [vmem:[%s6857_s3 + $0x270] sm:$0xf0]  ;;  %v3623_v27 = vor.u32 %v4511_v14, %v3620_v17  ;;  %v4481_v29 = vld [vmem:[%s6857_s3 + $0x1e4] sm:$0xf]  ;;  %v3263_v31 = vor.u32 %v4421_v16, %v3260_v18 }
  0x29   :  { %1094 = vmatpush.bf16.msra.mxu1 %v3479_v60  ;;  %v3258_v24 = vld [vmem:[%s6857_s3] sm:$0xf]  ;;  %v4423_v25 = vld [vmem:[%s6857_s3 + $0x10] sm:$0xf0]  ;;  %v3500_v30 = vld [vmem:[%s6857_s3 + $0x1f4] sm:$0xf0]  ;;  %v3567_v35 = vor.u32 %v4499_v20, %v3566_v19 }
  0x2a   :  { %1129 = vmatpush.bf16.msrb.mxu2 %v3563_v58  ;;  %v3418_v26 = vld [vmem:[%s6857_s3 + $0x140] sm:$0xf]  ;;  %v4463_v28 = vld [vmem:[%s6857_s3 + $0x150] sm:$0xf0]  ;;  %v3546_v32 = vld [vmem:[%s6857_s3 + $0x238] sm:$0xf]  ;;  %v3259_v37 = vor.u32 %v4423_v25, %v3258_v24  ;;  %v3503_v41 = vor.u32 %v4481_v29, %v3500_v30 }
  0x2b   :  { %1121 = vmatpush.bf16.msra.mxu3 %v3303_v2  ;;  %v3406_v33 = vld [vmem:[%s6857_s3 + $0x120] sm:$0xf]  ;;  %v4459_v34 = vld [vmem:[%s6857_s3 + $0x130] sm:$0xf0]  ;;  %v4494_v36 = vld [vmem:[%s6857_s3 + $0x248] sm:$0xf0]  ;;  %v3419_v40 = vor.u32 %v4463_v28, %v3418_v26 }
  0x2c   :  { %1082 = vmatpush.bf16.msra.mxu0 %v3299_v5  ;;  %v4476_v38 = vld [vmem:[%s6857_s3 + $0x1bc] sm:$0xf]  ;;  %v3480_v39 = vld [vmem:[%s6857_s3 + $0x1cc] sm:$0xf0]  ;;  %v1066_v42 = vsel %vm1061_vm0, %v3623_v27, 0  ;;  %v3407_v45 = vor.u32 %v4459_v34, %v3406_v33  ;;  %s5081_s0 = sld [smem:[#allocation3 + $0x1]]  ;;  %v3547_v48 = vor.u32 %v4494_v36, %v3546_v32  ;;  %v247_v32 = vlaneseq }
  0x2d   :  { %1095 = vmatpush.bf16.msra.mxu1 %v3459_v8  ;;  %v4506_v43 = vld [vmem:[%s6857_s3 + $0x2ac] sm:$0xf]  ;;  %v3600_v44 = vld [vmem:[%s6857_s3 + $0x2bc] sm:$0xf0]  ;;  %v3386_v46 = vld [vmem:[%s6857_s3 + $0xf8] sm:$0xf]  ;;  %v3483_v51 = vor.u32 %v4476_v38, %v3480_v39 }
  0x2e   :  { %1130 = vmatpush.bf16.msrb.mxu2 %v3543_v6  ;;  %v4454_v47 = vld [vmem:[%s6857_s3 + $0x108] sm:$0xf0]  ;;  %v3526_v49 = vld [vmem:[%s6857_s3 + $0x210] sm:$0xf]  ;;  %v4489_v50 = vld [vmem:[%s6857_s3 + $0x220] sm:$0xf0]  ;;  %v3603_v54 = vor.u32 %v4506_v43, %v3600_v44 }
  0x2f   :  { %1122 = vmatpush.bf16.msra.mxu3 %v3283_v15  ;;  %v4471_v52 = vld [vmem:[%s6857_s3 + $0x194] sm:$0xf]  ;;  %v3460_v53 = vld [vmem:[%s6857_s3 + $0x1a4] sm:$0xf0]  ;;  %s5095_s25 = sld [smem:[#allocation6 + $0x1]]  ;;  %v3387_v55 = vor.u32 %v4454_v47, %v3386_v46  ;;  %s73_s1 = sshra.s32 %s5071_s29, 3  ;;  %v3527_v60 = vor.u32 %v4489_v50, %v3526_v49 }
  0x30   :  { %1083 = vmatpush.bf16.msra.mxu0 %v3279_v21  ;;  %v4501_v56 = vld [vmem:[%s6857_s3 + $0x284] sm:$0xf]  ;;  %v3580_v57 = vld [vmem:[%s6857_s3 + $0x294] sm:$0xf0]  ;;  %s5103_s15 = sld [smem:[#allocation3 + $0x2]]  ;;  %s76_s20 = sand.u32 7, %s5071_s29  ;;  %v3463_v63 = vor.u32 %v4471_v52, %v3460_v53 }
  0x31   :  { %1096 = vmatpush.bf16.msra.mxu1 %v3439_v23  ;;  %v3366_v58 = vld [vmem:[%s6857_s3 + $0xd0] sm:$0xf]  ;;  %v4449_v59 = vld [vmem:[%s6857_s3 + $0xe0] sm:$0xf0]  ;;  %s3194_s21 = smul.u32 24, %s73_s1  ;;  %s82_s22 = sshra.s32 %s5073_s30, 3  ;;  %v3583_v0 = vor.u32 %v4501_v56, %v3580_v57 }
  0x32   :  { %1131 = vmatpush.bf16.msrb.mxu2 %v3523_v22  ;;  %v3506_v61 = vld [vmem:[%s6857_s3 + $0x1e8] sm:$0xf]  ;;  %v4484_v62 = vld [vmem:[%s6857_s3 + $0x1f8] sm:$0xf0]  ;;  %s85_s28 = sand.u32 7, %s5073_s30  ;;  %s3195_s14 = smul.u32 24, %s82_s22  ;;  %v3367_v1 = vor.u32 %v4449_v59, %v3366_v58 }
  0x33   :  { %1123 = vmatpush.bf16.msra.mxu3 %v3263_v31  ;;  %s94_s29 = sshra.s32 %s5081_s0, 3  ;;  %s3201_s16 = sld [smem:[#allocation6 + $0x2]]  ;;  %v3507_v2 = vor.u32 %v4484_v62, %v3506_v61  ;;  %vm5215_vm1 = vcmp.lt.s32.totalorder %v247_v32, 300  ;;  %v3486_v57 = vld [vmem:[%s6857_s3 + $0x1c0] sm:$0xf]  ;;  %vm1057_vm2 = vcmask 359424  }
  0x34   :  { %1084 = vmatpush.bf16.msra.mxu0 %v3259_v37  ;;  %s5122_s17 = sadd.s32 %s3194_s21, %s76_s20  ;;  %s5124_s18 = sadd.s32 %s3195_s14, %s85_s28  ;;  %v3286_v32 = vld [vmem:[%s6857_s3 + $0x30] sm:$0xf]  ;;  %vm2054_vm3 = vcmask 1043456   ;;  %vm2050_vm9 = vcmask 719872  }
  0x35   :  { %1097 = vmatpush.bf16.msra.mxu1 %v3419_v40  ;;  %s3198_s30 = smul.u32 24, %s94_s29  ;;  %s103_s19 = sshra.s32 %s5095_s25, 3 }
  0x36   :  { %1132 = vmatpush.bf16.msrb.mxu2 %v3503_v41  ;;  %s80_s23 = scalar_lea.vmem %s6856_s2, %s5122_s17  ;;  %s97_s24 = sand.u32 7, %s5081_s0 }
  0x37   :  { %1168 = vmatpush.bf16.msrb.mxu3 %v3567_v35  ;;  %s89_s21 = scalar_lea.vmem %s6856_s2, %s5124_s18  ;;  %s116_s27 = sshra.s32 %s5103_s15, 3  ;;  %v81_v3 = vld [vmem:[%s80_s23] ss:$8 sm:$0x7]  ;;  %v3626_v35 = vld [vmem:[%s6857_s3 + $0x2d8] sm:$0xf] }
  0x38   :  { %1147 = vmatpush.bf16.msrb.mxu0 %v1066_v42  ;;  %s106_s13 = sand.u32 7, %s5095_s25  ;;  %s3199_s28 = smul.u32 24, %s103_s19  ;;  %v90_v4 = vld [vmem:[%s89_s21] ss:$8 sm:$0x7] }
  0x39   :  { %1155 = vmatpush.bf16.msrb.mxu1 %v3407_v45  ;;  %s100_s14 = sadd.s32 %s3198_s30, %s97_s24  ;;  %s119_s12 = sand.u32 7, %s5103_s15  ;;  %v91_v7 = vsub.f32 %v81_v3, %v90_v4 }
  0x3a   :  { %1133 = vmatpush.bf16.msrb.mxu2 %v3483_v51  ;;  %s3202_s10 = smul.u32 24, %s116_s27  ;;  %s125_s29 = sshra.s32 %s3201_s16, 3 }
  0x3b   :  { %1169 = vmatpush.bf16.msrb.mxu3 %v3547_v48  ;;  %s128_s11 = sand.u32 7, %s3201_s16  ;;  %s3203_s8 = smul.u32 24, %s125_s29 }
  0x3c   :  { %1148 = vmatpush.bf16.msrb.mxu0 %v3603_v54  ;;  %s109_s9 = sadd.s32 %s3199_s28, %s106_s13  ;;  %s3204_s6 = sld [smem:[#allocation3 + $0x3]] }
  0x3d   :  { %1156 = vmatpush.bf16.msrb.mxu1 %v3387_v55  ;;  %s101_s0 = scalar_lea.vmem %s6856_s2, %s100_s14  ;;  %s122_s17 = sadd.s32 %s3202_s10, %s119_s12 }
  0x3e   :  { %1134 = vmatpush.bf16.msrb.mxu2 %v3463_v63  ;;  %s5142_s22 = sadd.s32 %s3203_s8, %s128_s11  ;;  %s3205_s18 = sld [smem:[#allocation6 + $0x3]]  ;;  %v102_v5 = vld [vmem:[%s101_s0] ss:$8 sm:$0x7] }
  0x3f   :  { %1170 = vmatpush.bf16.msrb.mxu3 %v3527_v60  ;;  %s110_s30 = scalar_lea.vmem %s6856_s2, %s109_s9  ;;  %s5147_s15 = sld [smem:[#allocation3 + $0x4]]  ;;  %v4479_v60 = vld [vmem:[%s6857_s3 + $0x1d0] sm:$0xf0] }
  0x40   :  { %1149 = vmatpush.bf16.msrb.mxu0 %v3583_v0  ;;  %s123_s13 = scalar_lea.vmem %s6856_s2, %s122_s17  ;;  %s5152_s24 = sld [smem:[#allocation6 + $0x4]]  ;;  %v111_v6 = vld [vmem:[%s110_s30] ss:$8 sm:$0x7]  ;;  %v3487_v63 = vor.u32 %v4479_v60, %v3486_v57  ;;  %v4466_v0 = vld [vmem:[%s6857_s3 + $0x16c] sm:$0xf] }
  0x41   :  { %1157 = vmatpush.bf16.msrb.mxu1 %v3367_v1  ;;  %s132_s8 = scalar_lea.vmem %s6856_s2, %s5142_s22  ;;  %s5158_s10 = sld [smem:[#allocation3 + $0x5]]  ;;  %v112_v8 = vsub.f32 %v102_v5, %v111_v6  ;;  %v124_v9 = vld [vmem:[%s123_s13] ss:$8 sm:$0x7]  ;;  %v4444_v6 = vld [vmem:[%s6857_s3 + $0xb8] sm:$0xf0] }
  0x42   :  { %s138_s11 = sshra.s32 %s3204_s6, 3  ;;  %s141_s12 = sand.u32 7, %s3204_s6  ;;  %v133_v10 = vld [vmem:[%s132_s8] ss:$8 sm:$0x7] }
  0x43   :  { %1171 = vmatpush.bf16.msrb.mxu3 %v3507_v2  ;;  %s3206_s9 = smul.u32 24, %s138_s11  ;;  %s5160_s27 = sld [smem:[#allocation6 + $0x5]]  ;;  %v113_v11 = vadd.f32 %v112_v8, %v91_v7  ;;  %v134_v12 = vsub.f32 %v124_v9, %v133_v10  ;;  %v3440_v1 = vld [vmem:[%s6857_s3 + $0x17c] sm:$0xf0]  ;;  %v3346_v5 = vld [vmem:[%s6857_s3 + $0xa8] sm:$0xf] }
  0x44   :  { %s147_s28 = sshra.s32 %s3205_s18, 3  ;;  %s150_s14 = sand.u32 7, %s3205_s18  ;;  %v3443_v4 = vor.u32 %v4466_v0, %v3440_v1  ;;  %v3347_v7 = vor.u32 %v4444_v6, %v3346_v5  ;;  %v3466_v8 = vld [vmem:[%s6857_s3 + $0x198] sm:$0xf]  ;;  %v4474_v9 = vld [vmem:[%s6857_s3 + $0x1a8] sm:$0xf0] }
  0x45   :  { %s144_s29 = sadd.s32 %s3206_s9, %s141_s12  ;;  %s3207_s1 = smul.u32 24, %s147_s28  ;;  %v135_v15 = vadd.f32 %v134_v12, %v113_v11  ;;  %v3467_v10 = vor.u32 %v4474_v9, %v3466_v8  ;;  %v4461_v12 = vld [vmem:[%s6857_s3 + $0x144] sm:$0xf]  ;;  %v4507_v1 = vld [vmem:[%s6857_s3 + $0x2b4] sm:$0xf] }
  0x46   :  { %s145_s26 = scalar_lea.vmem %s6856_s2, %s144_s29  ;;  %s160_s25 = sshra.s32 %s5147_s15, 3  ;;  %1135 = vmatpush.bf16.msrb.mxu2 %v3443_v4  ;;  %1158 = vmatpush.bf16.msrb.mxu1 %v3347_v7  ;;  %v4509_v60 = vld [vmem:[%s6857_s3 + $0x2c0] sm:$0xf0]  ;;  %v4447_v4 = vld [vmem:[%s6857_s3 + $0xd4] sm:$0xf] }
  0x47   :  { %s153_s6 = sadd.s32 %s3207_s1, %s150_s14  ;;  %s163_s23 = sand.u32 7, %s5147_s15  ;;  %v146_v13 = vld [vmem:[%s145_s26] ss:$8 sm:$0x7]  ;;  %1172 = vmatpush.bf16.msrb.mxu3 %v3487_v63  ;;  %v4455_v63 = vld [vmem:[%s6857_s3 + $0x110] sm:$0xf0] }
  0x48   :  { %s154_s19 = scalar_lea.vmem %s6856_s2, %s153_s6  ;;  %s3210_s18 = smul.u32 24, %s160_s25  ;;  %v3368_v5 = vld [vmem:[%s6857_s3 + $0xe4] sm:$0xf0]  ;;  %v4504_v8 = vld [vmem:[%s6857_s3 + $0x298] sm:$0xf0] }
  0x49   :  { %s169_s30 = sshra.s32 %s5152_s24, 3  ;;  %s172_s16 = sand.u32 7, %s5152_s24  ;;  %v155_v14 = vld [vmem:[%s154_s19] ss:$8 sm:$0x7] }
  0x4a   :  { %s166_s20 = sadd.s32 %s3210_s18, %s163_s23  ;;  %s3211_s7 = smul.u32 24, %s169_s30  ;;  %v156_v16 = vsub.f32 %v146_v13, %v155_v14  ;;  %v3420_v14 = vld [vmem:[%s6857_s3 + $0x154] sm:$0xf0]  ;;  %v3586_v7 = vld [vmem:[%s6857_s3 + $0x288] sm:$0xf] }
  0x4b   :  { %s167_s15 = scalar_lea.vmem %s6856_s2, %s166_s20  ;;  %s182_s9 = sshra.s32 %s5158_s10, 3  ;;  %1173 = vmatpush.bf16.msrb.mxu3 %v3467_v10  ;;  %v3374_v10 = vld [vmem:[%s6857_s3 + $0xd8] sm:$0xf] }
  0x4c   :  { %s175_s13 = sadd.s32 %s3211_s7, %s172_s16  ;;  %s185_s28 = sand.u32 7, %s5158_s10  ;;  %v168_v17 = vld [vmem:[%s167_s15] ss:$8 sm:$0x7]  ;;  %v157_v19 = vadd.f32 %v156_v16, %v135_v15  ;;  %v4439_v16 = vld [vmem:[%s6857_s3 + $0x90] sm:$0xf0] }
  0x4d   :  { %s176_s8 = scalar_lea.vmem %s6856_s2, %s175_s13  ;;  %s3214_s1 = smul.u32 24, %s182_s9  ;;  %v3326_v15 = vld [vmem:[%s6857_s3 + $0x80] sm:$0xf] }
  0x4e   :  { %s191_s17 = sshra.s32 %s5160_s27, 3  ;;  %s194_s24 = sand.u32 7, %s5160_s27  ;;  %v177_v18 = vld [vmem:[%s176_s8] ss:$8 sm:$0x7] }
  0x4f   :  { %s188_s22 = sadd.s32 %s3214_s1, %s185_s28  ;;  %s3215_s25 = smul.u32 24, %s191_s17  ;;  %v178_v20 = vsub.f32 %v168_v17, %v177_v18  ;;  %v3423_v18 = vor.u32 %v4461_v12, %v3420_v14  ;;  %v4450_v12 = vld [vmem:[%s6857_s3 + $0xe8] sm:$0xf0]  ;;  %v3588_v14 = vld [vmem:[%s6857_s3 + $0x29c] sm:$0xf0] }
  0x50   :  { %s189_s21 = scalar_lea.vmem %s6856_s2, %s188_s22  ;;  %s3216_s26 = sld [smem:[#allocation3 + $0x6]] }
  0x51   :  { %s197_s10 = sadd.s32 %s3215_s25, %s194_s24  ;;  %s3217_s0 = sld [smem:[#allocation6 + $0x6]]  ;;  %v190_v21 = vld [vmem:[%s189_s21] ss:$8 sm:$0x7]  ;;  %v179_v23 = vadd.f32 %v178_v20, %v157_v19  ;;  %v3327_v19 = vor.u32 %v4439_v16, %v3326_v15  ;;  %1136 = vmatpush.bf16.msrb.mxu2 %v3423_v18  ;;  %v3371_v15 = vor.u32 %v4447_v4, %v3368_v5  ;;  %v4442_v16 = vld [vmem:[%s6857_s3 + $0xac] sm:$0xf]  ;;  %v3587_v18 = vor.u32 %v4504_v8, %v3586_v7 }
  0x52   :  { %s198_s30 = scalar_lea.vmem %s6856_s2, %s197_s10  ;;  %s5188_s16 = sld [smem:[#allocation3 + $0x7]]  ;;  %v3446_v20 = vld [vmem:[%s6857_s3 + $0x170] sm:$0xf]  ;;  %v4500_v4 = vld [vmem:[%s6857_s3 + $0x278] sm:$0xf0] }
  0x53   :  { %s5190_s27 = sld [smem:[#allocation6 + $0x7]]  ;;  %v199_v22 = vld [vmem:[%s198_s30] ss:$8 sm:$0x7]  ;;  %1159 = vmatpush.bf16.msrb.mxu1 %v3327_v19  ;;  %v3375_v19 = vor.u32 %v4450_v12, %v3374_v10  ;;  %v4425_v8 = vld [vmem:[%s6857_s3 + $0x20] sm:$0xf0] }
  0x54   :  { %s5192_s20 = sld [smem:[#allocation3 + $0x80]]  ;;  %v200_v24 = vsub.f32 %v190_v21, %v199_v22  ;;  %v4469_v22 = vld [vmem:[%s6857_s3 + $0x180] sm:$0xf0]  ;;  %v3274_v7 = vld [vmem:[%s6857_s3 + $0x10] sm:$0xf] }
  0x55   :  { %s5194_s7 = sld [smem:[#allocation6 + $0x80]]  ;;  %v4477_v12 = vld [vmem:[%s6857_s3 + $0x1c4] sm:$0xf] }
  0x56   :  { %s204_s11 = sshra.s32 %s3216_s26, 3  ;;  %s207_s12 = sand.u32 7, %s3216_s26  ;;  %v201_v26 = vadd.f32 %v200_v24, %v179_v23  ;;  %v3447_v23 = vor.u32 %v4469_v22, %v3446_v20  ;;  %v3306_v24 = vld [vmem:[%s6857_s3 + $0x58] sm:$0xf]  ;;  %v4445_v22 = vld [vmem:[%s6857_s3 + $0xc0] sm:$0xf0] }
  0x57   :  { %s3218_s15 = smul.u32 24, %s204_s11  ;;  %s213_s9 = sshra.s32 %s3217_s0, 3 }
  0x58   :  { %s216_s13 = sand.u32 7, %s3217_s0  ;;  %s3219_s28 = smul.u32 24, %s213_s9  ;;  %1174 = vmatpush.bf16.msrb.mxu3 %v3447_v23 }
  0x59   :  { %s210_s14 = sadd.s32 %s3218_s15, %s207_s12  ;;  %s226_s29 = sshra.s32 %s5188_s16, 3 }
  0x5a   :  { %s211_s17 = scalar_lea.vmem %s6856_s2, %s210_s14  ;;  %s219_s24 = sadd.s32 %s3219_s28, %s216_s13 }
  0x5b   :  { %v212_v25 = vld [vmem:[%s211_s17] ss:$8 sm:$0x7]  ;;  %s220_s6 = scalar_lea.vmem %s6856_s2, %s219_s24  ;;  %s229_s23 = sand.u32 7, %s5188_s16 }
  0x5c   :  { %v221_v27 = vld [vmem:[%s220_s6] ss:$8 sm:$0x7]  ;;  %s3222_s21 = smul.u32 24, %s226_s29  ;;  %s235_s26 = sshra.s32 %s5190_s27, 3 }
  0x5d   :  { %v222_v28 = vsub.f32 %v212_v25, %v221_v27  ;;  %s238_s10 = sand.u32 7, %s5190_s27  ;;  %s3223_s0 = smul.u32 24, %s235_s26  ;;  %v3426_v27 = vld [vmem:[%s6857_s3 + $0x148] sm:$0xf] }
  0x5e   :  { %s232_s19 = sadd.s32 %s3222_s21, %s229_s23  ;;  %s254_s18 = sshra.s32 %s5192_s20, 3 }
  0x5f   :  { %s233_s12 = scalar_lea.vmem %s6856_s2, %s232_s19  ;;  %s241_s15 = sadd.s32 %s3223_s0, %s238_s10  ;;  %v223_v29 = vadd.f32 %v222_v28, %v201_v26  ;;  %v4434_v26 = vld [vmem:[%s6857_s3 + $0x68] sm:$0xf0]  ;;  %v4464_v28 = vld [vmem:[%s6857_s3 + $0x158] sm:$0xf0] }
  0x60   :  { %v234_v30 = vld [vmem:[%s233_s12] ss:$8 sm:$0x7]  ;;  %s242_s13 = scalar_lea.vmem %s6856_s2, %s241_s15  ;;  %s3226_s28 = smul.u32 24, %s254_s18 }
  0x61   :  { %v243_v31 = vld [vmem:[%s242_s13] ss:$8 sm:$0x7]  ;;  %s263_s14 = sshra.s32 %s5194_s7, 3  ;;  %s257_s27 = sand.u32 7, %s5192_s20 }
  0x62   :  { %v244_v33 = vsub.f32 %v234_v30, %v243_v31  ;;  %s3228_s29 = sld [smem:[#allocation3 + $0x81]]  ;;  %s3227_s8 = smul.u32 24, %s263_s14  ;;  %v3427_v30 = vor.u32 %v4464_v28, %v3426_v27  ;;  %v3328_v27 = vld [vmem:[%s6857_s3 + $0x94] sm:$0xf0]  ;;  %v4497_v28 = vld [vmem:[%s6857_s3 + $0x264] sm:$0xf] }
  0x63   :  { %s5219_s1 = sadd.s32 %s3226_s28, %s257_s27  ;;  %s3229_s17 = sld [smem:[#allocation6 + $0x81]] }
  0x64   :  { %v245_v34 = vadd.f32 %v244_v33, %v223_v29  ;;  %s266_s24 = sand.u32 7, %s5194_s7  ;;  %s3232_s22 = sld [smem:[#allocation3 + $0x82]]  ;;  %v3307_v29 = vor.u32 %v4434_v26, %v3306_v24  ;;  %v4429_v33 = vld [vmem:[%s6857_s3 + $0x40] sm:$0xf0]  ;;  %1175 = vmatpush.bf16.msrb.mxu3 %v3427_v30  ;;  %v4515_v26 = vld [vmem:[%s6857_s3 + $0x2f0] sm:$0x30] }
  0x65   :  { %s261_s20 = scalar_lea.vmem %s6856_s2, %s5219_s1  ;;  %s5228_s23 = sld [smem:[#allocation6 + $0x82]]  ;;  %v4437_v24 = vld [vmem:[%s6857_s3 + $0x84] sm:$0xf] }
  0x66   :  { %v246_v36 = vmul.f32 0.125, %v245_v34  ;;  %s5230_s21 = sadd.s32 %s3227_s8, %s266_s24  ;;  %s3236_s0 = sld [smem:[#allocation3 + $0x83]]  ;;  %v262_v37 = vld [vmem:[%s261_s20] ss:$8 sm:$0x7]  ;;  %1160 = vmatpush.bf16.msrb.mxu1 %v3307_v29  ;;  %v3287_v34 = vor.u32 %v4429_v33, %v3286_v32 }
  0x67   :  { %s3237_s12 = sld [smem:[#allocation6 + $0x83]]  ;;  %s270_s27 = scalar_lea.vmem %s6856_s2, %s5230_s21  ;;  %v3568_v29 = vld [vmem:[%s6857_s3 + $0x274] sm:$0xf0]  ;;  %v4440_v32 = vld [vmem:[%s6857_s3 + $0x98] sm:$0xf0] }
  0x68   :  { %251 = vst.msk [vmem:[#allocation2] ss:$2 sm:$0x7] %vm5215_vm1, %v246_v36  ;;  %s275_s26 = sshra.s32 %s3228_s29, 3  ;;  %s278_s19 = sand.u32 7, %s3228_s29 }
  0x69   :  { %s3230_s10 = smul.u32 24, %s275_s26  ;;  %s284_s7 = sshra.s32 %s3229_s17, 3  ;;  %v271_v38 = vld [vmem:[%s270_s27] ss:$8 sm:$0x7] }
  0x6a   :  { %s287_s18 = sand.u32 7, %s3229_s17  ;;  %s3231_s30 = smul.u32 24, %s284_s7  ;;  %v272_v41 = vsub.f32 %v262_v37, %v271_v38  ;;  %1161 = vmatpush.bf16.msrb.mxu1 %v3287_v34  ;;  %v3266_v36 = vld [vmem:[%s6857_s3 + $0x8] sm:$0xf]  ;;  %v4424_v37 = vld [vmem:[%s6857_s3 + $0x18] sm:$0xf0]  ;;  %v3331_v34 = vor.u32 %v4437_v24, %v3328_v27 }
  0x6b   :  { %s297_s11 = sshra.s32 %s3232_s22, 3  ;;  %s281_s15 = sadd.s32 %s3230_s10, %s278_s19  ;;  %v3267_v38 = vor.u32 %v4424_v37, %v3266_v36  ;;  %v3571_v36 = vor.u32 %v4497_v28, %v3568_v29  ;;  %v4432_v37 = vld [vmem:[%s6857_s3 + $0x5c] sm:$0xf]  ;;  %v4490_v24 = vld [vmem:[%s6857_s3 + $0x228] sm:$0xf0] }
  0x6c   :  { %s300_s16 = sand.u32 7, %s3232_s22  ;;  %s290_s9 = sadd.s32 %s3231_s30, %s287_s18  ;;  %v4559_v27 = vld [vmem:[%s6859_s5 + $0x158] sm:$0xf0]  ;;  %v3919_v29 = vld [vmem:[%s6859_s5 + $0x228] sm:$0xf] }
  0x6d   :  { %s3234_s13 = smul.u32 24, %s297_s11  ;;  %s306_s8 = sshra.s32 %s5228_s23, 3 }
  0x6e   :  { %s282_s6 = scalar_lea.vmem %s6856_s2, %s281_s15  ;;  %s291_s10 = scalar_lea.vmem %s6856_s2, %s290_s9  ;;  %1162 = vmatpush.bf16.msrb.mxu1 %v3267_v38  ;;  %v3308_v38 = vld [vmem:[%s6857_s3 + $0x6c] sm:$0xf0] }
  0x6f   :  { %s5240_s29 = sadd.s32 %s3234_s13, %s300_s16  ;;  %s319_s22 = sshra.s32 %s3236_s0, 3  ;;  %v283_v39 = vld [vmem:[%s282_s6] ss:$8 sm:$0x7] }
  0x70   :  { %s309_s19 = sand.u32 7, %s5228_s23  ;;  %s3235_s7 = smul.u32 24, %s306_s8  ;;  %v292_v40 = vld [vmem:[%s291_s10] ss:$8 sm:$0x7] }
  0x71   :  { %s304_s21 = scalar_lea.vmem %s6856_s2, %s5240_s29  ;;  %s3238_s11 = smul.u32 24, %s319_s22  ;;  %v293_v42 = vsub.f32 %v283_v39, %v292_v40  ;;  %v4514_v40 = vld [vmem:[%s6857_s3 + $0x2e8] sm:$0x30] }
  0x72   :  { %s322_s28 = sand.u32 7, %s3236_s0  ;;  %s328_s14 = sshra.s32 %s3237_s12, 3  ;;  %v305_v43 = vld [vmem:[%s304_s21] ss:$8 sm:$0x7] }
  0x73   :  { %s331_s24 = sand.u32 7, %s3237_s12  ;;  %s3239_s15 = smul.u32 24, %s328_s14  ;;  %v294_v45 = vadd.f32 %v293_v42, %v272_v41  ;;  %v4512_v41 = vld [vmem:[%s6857_s3 + $0x2dc] sm:$0xf]  ;;  %v3628_v42 = vld [vmem:[%s6857_s3 + $0x2ec] sm:$0x30] }
  0x74   :  { %s312_s25 = sadd.s32 %s3235_s7, %s309_s19  ;;  %s3240_s16 = sld [smem:[#allocation3 + $0x84]] }
  0x75   :  { %s5250_s13 = sadd.s32 %s3238_s11, %s322_s28  ;;  %s3241_s17 = sld [smem:[#allocation6 + $0x84]] }
  0x76   :  { %s5257_s23 = sadd.s32 %s3239_s15, %s331_s24  ;;  %s5259_s8 = sld [smem:[#allocation3 + $0x85]] }
  0x77   :  { %s313_s29 = scalar_lea.vmem %s6856_s2, %s312_s25  ;;  %s5264_s22 = sld [smem:[#allocation6 + $0x85]] }
  0x78   :  { %s326_s1 = scalar_lea.vmem %s6856_s2, %s5250_s13  ;;  %s5270_s20 = sld [smem:[#allocation3 + $0x86]]  ;;  %v314_v44 = vld [vmem:[%s313_s29] ss:$8 sm:$0x7] }
  0x79   :  { %s335_s30 = scalar_lea.vmem %s6856_s2, %s5257_s23  ;;  %s5276_s11 = sld [smem:[#allocation6 + $0x86]]  ;;  %v315_v46 = vsub.f32 %v305_v43, %v314_v44  ;;  %v327_v47 = vld [vmem:[%s326_s1] ss:$8 sm:$0x7]  ;;  %v4457_v43 = vld [vmem:[%s6857_s3 + $0x124] sm:$0xf] }
  0x7a   :  { %s341_s6 = sshra.s32 %s3240_s16, 3  ;;  %s344_s28 = sand.u32 7, %s3240_s16  ;;  %v336_v48 = vld [vmem:[%s335_s30] ss:$8 sm:$0x7] }
  0x7b   :  { %s3242_s10 = smul.u32 24, %s341_s6  ;;  %s350_s14 = sshra.s32 %s3241_s17, 3  ;;  %v316_v49 = vadd.f32 %v315_v46, %v294_v45  ;;  %v337_v50 = vsub.f32 %v327_v47, %v336_v48  ;;  %v3408_v44 = vld [vmem:[%s6857_s3 + $0x134] sm:$0xf0]  ;;  %v3627_v45 = vor.u32 %v4514_v40, %v3626_v35  ;;  %v4452_v46 = vld [vmem:[%s6857_s3 + $0xfc] sm:$0xf] }
  0x7c   :  { %s353_s24 = sand.u32 7, %s3241_s17  ;;  %s3243_s15 = smul.u32 24, %s350_s14  ;;  %v3388_v47 = vld [vmem:[%s6857_s3 + $0x10c] sm:$0xf0]  ;;  %v3414_v48 = vld [vmem:[%s6857_s3 + $0x128] sm:$0xf] }
  0x7d   :  { %s347_s25 = sadd.s32 %s3242_s10, %s344_s28  ;;  %s363_s13 = sshra.s32 %s5259_s8, 3  ;;  %v338_v53 = vadd.f32 %v337_v50, %v316_v49  ;;  %v4460_v49 = vld [vmem:[%s6857_s3 + $0x138] sm:$0xf0]  ;;  %v3631_v50 = vor.u32 %v4512_v41, %v3628_v42  ;;  %v1069_v57 = vsel %vm1061_vm0, %v3627_v45, 0  ;;  %v3548_v35 = vld [vmem:[%s6857_s3 + $0x24c] sm:$0xf0] }
  0x7e   :  { %s348_s23 = scalar_lea.vmem %s6856_s2, %s347_s25  ;;  %s356_s0 = sadd.s32 %s3243_s15, %s353_s24  ;;  %v3314_v41 = vld [vmem:[%s6857_s3 + $0x60] sm:$0xf]  ;;  %v4435_v42 = vld [vmem:[%s6857_s3 + $0x70] sm:$0xf0]  ;;  %v4510_v45 = vld [vmem:[%s6857_s3 + $0x2c8] sm:$0xf0] }
  0x7f   :  { %s357_s12 = scalar_lea.vmem %s6856_s2, %s356_s0  ;;  %s366_s19 = sand.u32 7, %s5259_s8  ;;  %v349_v51 = vld [vmem:[%s348_s23] ss:$8 sm:$0x7]  ;;  %v1072_v0 = vsel %vm1061_vm0, %v3631_v50, 0 }
  0x80   :  { %s3246_s17 = smul.u32 24, %s363_s13  ;;  %s372_s29 = sshra.s32 %s5264_s22, 3  ;;  %v358_v52 = vld [vmem:[%s357_s12] ss:$8 sm:$0x7] }
  0x81   :  { %s375_s7 = sand.u32 7, %s5264_s22  ;;  %s3247_s27 = smul.u32 24, %s372_s29  ;;  %v359_v54 = vsub.f32 %v349_v51, %v358_v52  ;;  %v4487_v50 = vld [vmem:[%s6857_s3 + $0x214] sm:$0xf] }
  0x82   :  { %s369_s18 = sadd.s32 %s3246_s17, %s366_s19  ;;  %s385_s6 = sshra.s32 %s5270_s20, 3 }
  0x83   :  { %s370_s10 = scalar_lea.vmem %s6856_s2, %s369_s18  ;;  %s378_s14 = sadd.s32 %s3247_s27, %s375_s7  ;;  %v360_v58 = vadd.f32 %v359_v54, %v338_v53  ;;  %v3411_v53 = vor.u32 %v4457_v43, %v3408_v44  ;;  %v3614_v44 = vld [vmem:[%s6857_s3 + $0x2b8] sm:$0xf] }
  0x84   :  { %s379_s30 = scalar_lea.vmem %s6856_s2, %s378_s14  ;;  %s388_s15 = sand.u32 7, %s5270_s20  ;;  %v371_v55 = vld [vmem:[%s370_s10] ss:$8 sm:$0x7] }
  0x85   :  { %s3250_s25 = smul.u32 24, %s385_s6  ;;  %s394_s13 = sshra.s32 %s5276_s11, 3  ;;  %v380_v56 = vld [vmem:[%s379_s30] ss:$8 sm:$0x7] }
  0x86   :  { %s397_s22 = sand.u32 7, %s5276_s11  ;;  %s3251_s26 = smul.u32 24, %s394_s13  ;;  %v381_v59 = vsub.f32 %v371_v55, %v380_v56 }
  0x87   :  { %s391_s9 = sadd.s32 %s3250_s25, %s388_s15  ;;  %s3252_s0 = sld [smem:[#allocation3 + $0x87]] }
  0x88   :  { %s392_s21 = scalar_lea.vmem %s6856_s2, %s391_s9  ;;  %s400_s12 = sadd.s32 %s3251_s26, %s397_s22  ;;  %v382_v2 = vadd.f32 %v381_v59, %v360_v58  ;;  %v3606_v58 = vld [vmem:[%s6857_s3 + $0x2b0] sm:$0xf] }
  0x89   :  { %s401_s29 = scalar_lea.vmem %s6856_s2, %s400_s12  ;;  %s5304_s20 = sld [smem:[#allocation6 + $0x87]]  ;;  %v393_v61 = vld [vmem:[%s392_s21] ss:$8 sm:$0x7]  ;;  %v3607_v6 = vor.u32 %v4509_v60, %v3606_v58  ;;  %v4505_v60 = vld [vmem:[%s6857_s3 + $0x2a0] sm:$0xf0] }
  0x8a   :  { %v402_v62 = vld [vmem:[%s401_s29] ss:$8 sm:$0x7]  ;;  %s6881_s10 = sld [smem:[#allocation13_spill]] }
  0x8b   :  { %v403_v3 = vsub.f32 %v393_v61, %v402_v62  ;;  %v3415_v61 = vor.u32 %v4460_v49, %v3414_v48  ;;  %v3394_v62 = vld [vmem:[%s6857_s3 + $0x100] sm:$0xf]  ;;  %v4427_v48 = vld [vmem:[%s6857_s3 + $0x34] sm:$0xf]  ;;  %v3288_v49 = vld [vmem:[%s6857_s3 + $0x44] sm:$0xf0] }
  0x8c   :  { %v3395_v9 = vor.u32 %v4455_v63, %v3394_v62  ;;  %v3594_v58 = vld [vmem:[%s6857_s3 + $0x290] sm:$0xf]  ;;  %v4422_v63 = vld [vmem:[%s6857_s3 + $0xc] sm:$0xf]  ;;  %s6882_s13 = sld [smem:[#allocation12_spill]] }
  0x8d   :  { %s407_s6 = sshra.s32 %s3252_s0, 3  ;;  %s410_s28 = sand.u32 7, %s3252_s0  ;;  %v404_v13 = vadd.f32 %v403_v3, %v382_v2  ;;  %v3608_v2 = vld [vmem:[%s6857_s3 + $0x2c4] sm:$0xf0]  ;;  %v3391_v3 = vor.u32 %v4452_v46, %v3388_v47  ;;  %v3311_v46 = vor.u32 %v4432_v37, %v3308_v38  ;;  %v4485_v37 = vld [vmem:[%s6857_s3 + $0x200] sm:$0xf0] }
  0x8e   :  { %s3254_s1 = smul.u32 24, %s407_s6  ;;  %s6883_s17 = sld [smem:[#allocation15_spill]] }
  0x8f   :  { %s416_s30 = sshra.s32 %s5304_s20, 3  ;;  %s419_s15 = sand.u32 7, %s5304_s20 }
  0x90   :  { %s413_s9 = sadd.s32 %s3254_s1, %s410_s28  ;;  %s3255_s0 = smul.u32 24, %s416_s30 }
  0x91   :  { %s414_s29 = scalar_lea.vmem %s6856_s2, %s413_s9  ;;  %s6884_s1 = sld [smem:[#allocation14_spill]] }
  0x92   :  { %v415_v11 = vld [vmem:[%s414_s29] ss:$8 sm:$0x7]  ;;  %s422_s20 = sadd.s32 %s3255_s0, %s419_s15  ;;  %s6885_s8 = sld [smem:[#allocation17_spill]] }
  0x93   :  { %s423_s6 = scalar_lea.vmem %s6856_s2, %s422_s20  ;;  %s6887_s29 = sld [smem:[#allocation18_spill]] }
  0x94   :  { %v424_v17 = vld [vmem:[%s423_s6] ss:$8 sm:$0x7]  ;;  %s4770_s20 = smov [#allocation8]   ;;  %s6888_s18 = sld [smem:[#allocation19_spill]] }
  0x95   :  { %v425_v21 = vsub.f32 %v415_v11, %v424_v17  ;;  %v3611_v11 = vor.u32 %v4507_v1, %v3608_v2  ;;  %v3348_v17 = vld [vmem:[%s6857_s3 + $0xbc] sm:$0xf0]  ;;  %v4482_v1 = vld [vmem:[%s6857_s3 + $0x1ec] sm:$0xf]  ;;  %s3085_s7 = sshll.u32 %s4770_s20, 4  ;;  %s3086_s7 = int_to_ptr.vmem [resolvable:$true] %s3085_s7 }
  0x96   :  { %v3351_v23 = vor.u32 %v4442_v16, %v3348_v17  ;;  %v3508_v2 = vld [vmem:[%s6857_s3 + $0x1fc] sm:$0xf0]  ;;  %v3275_v16 = vor.u32 %v4425_v8, %v3274_v7  ;;  %v4470_v7 = vld [vmem:[%s6857_s3 + $0x188] sm:$0xf0] }
  0x97   :  { %v426_v25 = vadd.f32 %v425_v21, %v404_v13  ;;  %v4502_v13 = vld [vmem:[%s6857_s3 + $0x28c] sm:$0xf]  ;;  %v3354_v21 = vld [vmem:[%s6857_s3 + $0xb0] sm:$0xf]  ;;  %v3511_v10 = vor.u32 %v4482_v1, %v3508_v2  ;;  %v4535_v2 = vld [vmem:[%s6859_s5 + $0x98] sm:$0xf0] }
  0x98   :  { %v3591_v20 = vor.u32 %v4502_v13, %v3588_v14  ;;  %v3355_v30 = vor.u32 %v4445_v22, %v3354_v21  ;;  %v3488_v13 = vld [vmem:[%s6857_s3 + $0x1d4] sm:$0xf0]  ;;  %v3554_v14 = vld [vmem:[%s6857_s3 + $0x240] sm:$0xf]  ;;  %v4472_v21 = vld [vmem:[%s6857_s3 + $0x19c] sm:$0xf] }
  0x99   :  { %v427_v31 = vmul.f32 0.125, %v426_v25  ;;  %v3634_v25 = vld [vmem:[%s6857_s3 + $0x2e0] sm:$0xf]  ;;  %v3491_v17 = vor.u32 %v4477_v12, %v3488_v13  ;;  %v3468_v22 = vld [vmem:[%s6857_s3 + $0x1ac] sm:$0xf0] }
  0x9a   :  { %v3635_v33 = vor.u32 %v4515_v26, %v3634_v25  ;;  %v3811_v26 = vld [vmem:[%s6859_s5 + $0x150] sm:$0xf]  ;;  %v3471_v28 = vor.u32 %v4472_v21, %v3468_v22  ;;  %v4547_v13 = vld [vmem:[%s6859_s5 + $0xf8] sm:$0xf0]  ;;  %v3679_v22 = vld [vmem:[%s6859_s5 + $0x48] sm:$0xf] }
  0x9b   :  { %429 = vst.msk [vmem:[#allocation2 + $0x1] ss:$2 sm:$0x7] %vm5215_vm1, %v427_v31  ;;  %v3334_v31 = vld [vmem:[%s6857_s3 + $0x88] sm:$0xf]  ;;  %v3812_v38 = vor.u32 %v4559_v27, %v3811_v26  ;;  %s3087_s6 = sshll.u32 %s6888_s18, 4  ;;  %s3088_s6 = int_to_ptr.hbm [resolvable:$true] %s3087_s6 }
  0x9c   :  { %v3335_v40 = vor.u32 %v4440_v32, %v3334_v31  ;;  %v1075_v43 = vsel %vm1061_vm0, %v3635_v33, 0  ;;  %v4467_v32 = vld [vmem:[%s6857_s3 + $0x174] sm:$0xf]  ;;  %v3448_v33 = vld [vmem:[%s6857_s3 + $0x184] sm:$0xf0] }
  0x9d   :  { %v3763_v12 = vld [vmem:[%s6859_s5 + $0xf0] sm:$0xf]  ;;  %v4544_v26 = vld [vmem:[%s6859_s5 + $0xe0] sm:$0xf0]  ;;  %v3883_v27 = vld [vmem:[%s6859_s5 + $0x1e0] sm:$0xf] }
  0xa2   :  { %v430_v39 = vld [vmem:[#allocation2] sm:$0x3f] }
  0xa3   :  { %432 = vst [vmem:[#allocation1] ss:$4 sm:$0xff] %v430_v39  ;;  %v4492_v39 = vld [vmem:[%s6857_s3 + $0x23c] sm:$0xf] }
  0xa4   :  { %v3551_v47 = vor.u32 %v4492_v39, %v3548_v35  ;;  %v3907_v39 = vld [vmem:[%s6859_s5 + $0x210] sm:$0xf]  ;;  %v4583_v35 = vld [vmem:[%s6859_s5 + $0x218] sm:$0xf0] }
  0xaa   :  { %v433_v51 = vld.sshfl [vmem:[#allocation1] sm:$0xff pattern:$0x73625140]  ;;  %v435_v52 = vld.sshfl [vmem:[#allocation1 + $0x10] sm:$0xff pattern:$0x73625140] }
  0xab   :  { %v5412_v54 = vpack.c.bf16 %v433_v51, %v433_v51  ;;  %v5414_v55 = vpack.c.bf16 %v435_v52, %v435_v52  ;;  %v434_v56 = vld.sshfl [vmem:[#allocation1 + $0x8] sm:$0xff pattern:$0x73625140]  ;;  %v3315_v52 = vor.u32 %v4435_v42, %v3314_v41  ;;  %v4556_v41 = vld [vmem:[%s6859_s5 + $0x140] sm:$0xf0]  ;;  %v3451_v42 = vor.u32 %v4467_v32, %v3448_v33 }
  0xac   :  { %v5420_v59 = vpack.c.bf16 %v434_v56, %v434_v56  ;;  %v3528_v51 = vld [vmem:[%s6857_s3 + $0x224] sm:$0xf0]  ;;  %v3615_v56 = vor.u32 %v4510_v45, %v3614_v44  ;;  %v4580_v44 = vld [vmem:[%s6859_s5 + $0x200] sm:$0xf0]  ;;  %v3739_v33 = vld [vmem:[%s6859_s5 + $0xc0] sm:$0xf] }
  0xad   :  { %1085 = vmatmul.bf16.vlgmr.msra.gmra.mxu0 %v5412_v54  ;;  %3636 = vmatmul.msk.bf16.vlgmr.msra.gmra.mxu2 %vm1057_vm2, %v5414_v55  ;;  %v3531_v62 = vor.u32 %v4487_v50, %v3528_v51  ;;  %v3727_v50 = vld [vmem:[%s6859_s5 + $0xa8] sm:$0xf]  ;;  %v4538_v51 = vld [vmem:[%s6859_s5 + $0xb0] sm:$0xf0] }
  0xae   :  { %1194 = vmatpush.bf16.msra.mxu0 %v3411_v53  ;;  %1098 = vmatmul.bf16.vlgmr.msra.gmra.mxu1 %v5420_v59  ;;  %v3294_v53 = vld [vmem:[%s6857_s3 + $0x38] sm:$0xf] }
  0xaf   :  { %1186 = vmatpush.bf16.msra.mxu2 %v1069_v57  ;;  %1124 = vmatmul.bf16.vlgmr.msra.gmra.mxu3 %v5412_v54  ;;  %v4430_v57 = vld [vmem:[%s6857_s3 + $0x48] sm:$0xf0] }
  0xb0   :  { %1233 = vmatpush.bf16.msra.mxu3 %v3415_v61  ;;  %1225 = vmatpush.bf16.msra.mxu1 %v1072_v0  ;;  %v3291_v61 = vor.u32 %v4427_v48, %v3288_v49  ;;  %v3268_v0 = vld [vmem:[%s6857_s3 + $0x1c] sm:$0xf0]  ;;  %v3295_v5 = vor.u32 %v4430_v57, %v3294_v53  ;;  %v3494_v48 = vld [vmem:[%s6857_s3 + $0x1c8] sm:$0xf]  ;;  %v4480_v49 = vld [vmem:[%s6857_s3 + $0x1d8] sm:$0xf0] }
  0xb1   :  { %v3787_v53 = vld [vmem:[%s6859_s5 + $0x120] sm:$0xf] }
  0xb2   :  { %1195 = vmatpush.bf16.msra.mxu0 %v3391_v3  ;;  %v3574_v3 = vld [vmem:[%s6857_s3 + $0x268] sm:$0xf] }
  0xb3   :  { %1187 = vmatpush.bf16.msra.mxu2 %v3607_v6  ;;  %v3595_v6 = vor.u32 %v4505_v60, %v3594_v58  ;;  %v3495_v60 = vor.u32 %v4480_v49, %v3494_v48 }
  0xb4   :  { %1234 = vmatpush.bf16.msra.mxu3 %v3395_v9  ;;  %1226 = vmatpush.bf16.msra.mxu1 %v3611_v11  ;;  %v3271_v9 = vor.u32 %v4422_v63, %v3268_v0  ;;  %v3575_v11 = vor.u32 %v4500_v4, %v3574_v3  ;;  %v4475_v63 = vld [vmem:[%s6857_s3 + $0x1b0] sm:$0xf0]  ;;  %v3715_v0 = vld [vmem:[%s6859_s5 + $0x90] sm:$0xf]  ;;  %v3775_v3 = vld [vmem:[%s6859_s5 + $0x108] sm:$0xf] }
  0xb5   :  { %v4550_v4 = vld [vmem:[%s6859_s5 + $0x110] sm:$0xf0]  ;;  %v3716_v8 = vor.u32 %v4535_v2, %v3715_v0  ;;  %v3705_v2 = vld [vmem:[%s6859_s5 + $0x84] sm:$0xf0] }
  0xb6   :  { %1196 = vmatpush.bf16.msra.mxu0 %v3371_v15  ;;  %v4495_v15 = vld [vmem:[%s6857_s3 + $0x250] sm:$0xf0] }
  0xb7   :  { %1188 = vmatpush.bf16.msra.mxu2 %v3587_v18  ;;  %v3823_v18 = vld [vmem:[%s6859_s5 + $0x168] sm:$0xf] }
  0xb8   :  { %1235 = vmatpush.bf16.msra.mxu3 %v3375_v19  ;;  %1227 = vmatpush.bf16.msra.mxu1 %v3591_v20  ;;  %v4562_v19 = vld [vmem:[%s6859_s5 + $0x170] sm:$0xf0]  ;;  %v3555_v20 = vor.u32 %v4495_v15, %v3554_v14  ;;  %v3434_v15 = vld [vmem:[%s6857_s3 + $0x150] sm:$0xf] }
  0xb9   :  { %v3824_v25 = vor.u32 %v4562_v19, %v3823_v18  ;;  %v3764_v18 = vor.u32 %v4547_v13, %v3763_v12  ;;  %v3691_v19 = vld [vmem:[%s6859_s5 + $0x60] sm:$0xf]  ;;  %v4561_v12 = vld [vmem:[%s6859_s5 + $0x16c] sm:$0xf] }
  0xba   :  { %1197 = vmatpush.bf16.msra.mxu0 %v3351_v23  ;;  %v3534_v23 = vld [vmem:[%s6857_s3 + $0x218] sm:$0xf] }
  0xbb   :  { %v3535_v31 = vor.u32 %v4490_v24, %v3534_v23  ;;  %v4526_v23 = vld [vmem:[%s6859_s5 + $0x50] sm:$0xf0] }
  0xbc   :  { %1236 = vmatpush.bf16.msra.mxu3 %v3355_v30  ;;  %v4586_v30 = vld [vmem:[%s6859_s5 + $0x230] sm:$0xf0]  ;;  %v3680_v24 = vor.u32 %v4526_v23, %v3679_v22 }
  0xbd   :  { %1137 = vmatmul.bf16.vlgmr.msrb.gmra.mxu2 %v5420_v59  ;;  %3637 = vmatmul.msk.bf16.vlgmr.msrb.gmra.mxu0 %vm1057_vm2, %v5414_v55  ;;  %v4558_v23 = vld [vmem:[%s6859_s5 + $0x154] sm:$0xf] }
  0xbe   :  { %1198 = vmatpush.bf16.msra.mxu0 %v3331_v34  ;;  %1207 = vmatpush.bf16.msrb.mxu2 %v3571_v36  ;;  %v3514_v34 = vld [vmem:[%s6857_s3 + $0x1f0] sm:$0xf]  ;;  %v3920_v36 = vor.u32 %v4586_v30, %v3919_v29  ;;  %v4577_v29 = vld [vmem:[%s6859_s5 + $0x1e8] sm:$0xf0] }
  0xbf   :  { %1163 = vmatmul.bf16.vlgmr.msrb.gmra.mxu1 %v5412_v54  ;;  %1176 = vmatmul.bf16.vlgmr.msrb.gmra.mxu3 %v5420_v59  ;;  %v3515_v45 = vor.u32 %v4485_v37, %v3514_v34  ;;  %v3884_v30 = vor.u32 %v4577_v29, %v3883_v27  ;;  %v4541_v34 = vld [vmem:[%s6859_s5 + $0xc8] sm:$0xf0]  ;;  %v3967_v27 = vld [vmem:[%s6859_s5 + $0x288] sm:$0xf] }
  0xc0   :  { %1237 = vmatpush.bf16.msra.mxu3 %v3335_v40  ;;  %1264 = vmatpush.bf16.msrb.mxu1 %v1075_v43  ;;  %v3799_v40 = vld [vmem:[%s6859_s5 + $0x138] sm:$0xf]  ;;  %v3740_v37 = vor.u32 %v4541_v34, %v3739_v33  ;;  %v3669_v34 = vld [vmem:[%s6859_s5 + $0x3c] sm:$0xf0] }
  0xc1   :  { %v3895_v43 = vld [vmem:[%s6859_s5 + $0x1f8] sm:$0xf] }
  0xc2   :  { %1199 = vmatpush.bf16.msra.mxu0 %v3311_v46  ;;  %1208 = vmatpush.bf16.msrb.mxu2 %v3551_v47  ;;  %v4462_v46 = vld [vmem:[%s6857_s3 + $0x14c] sm:$0xf]  ;;  %v3428_v47 = vld [vmem:[%s6857_s3 + $0x15c] sm:$0xf0]  ;;  %v3896_v57 = vor.u32 %v4580_v44, %v3895_v43  ;;  %v4015_v43 = vld [vmem:[%s6859_s5 + $0x2e8] sm:$0xf] }
  0xc3   :  { %v3431_v58 = vor.u32 %v4462_v46, %v3428_v47  ;;  %v3859_v46 = vld [vmem:[%s6859_s5 + $0x1b0] sm:$0xf]  ;;  %v4571_v47 = vld [vmem:[%s6859_s5 + $0x1b8] sm:$0xf0] }
  0xc4   :  { %1238 = vmatpush.bf16.msra.mxu3 %v3315_v52  ;;  %1265 = vmatpush.bf16.msrb.mxu1 %v3615_v56  ;;  %v3800_v52 = vor.u32 %v4556_v41, %v3799_v40  ;;  %v4553_v56 = vld [vmem:[%s6859_s5 + $0x128] sm:$0xf0]  ;;  %v3860_v49 = vor.u32 %v4571_v47, %v3859_v46  ;;  %v3657_v46 = vld [vmem:[%s6859_s5 + $0x24] sm:$0xf0]  ;;  %v4552_v47 = vld [vmem:[%s6859_s5 + $0x124] sm:$0xf] }
  0xc5   :  { %v3788_v1 = vor.u32 %v4553_v56, %v3787_v53  ;;  %v3643_v53 = vld [vmem:[%s6859_s5] sm:$0xf]  ;;  %v4517_v56 = vld [vmem:[%s6859_s5 + $0x8] sm:$0xf0] }
  0xc6   :  { %1200 = vmatpush.bf16.msra.mxu0 %v3291_v61  ;;  %1209 = vmatpush.bf16.msrb.mxu2 %v3531_v62  ;;  %v3728_v61 = vor.u32 %v4538_v51, %v3727_v50  ;;  %v3474_v62 = vld [vmem:[%s6857_s3 + $0x1a0] sm:$0xf]  ;;  %v4534_v50 = vld [vmem:[%s6859_s5 + $0x94] sm:$0xf] }
  0xc7   :  { %v3717_v51 = vld [vmem:[%s6859_s5 + $0x9c] sm:$0xf0] }
  0xc8   :  { %1239 = vmatpush.bf16.msra.mxu3 %v3295_v5  ;;  %1266 = vmatpush.bf16.msrb.mxu1 %v3595_v6  ;;  %v3475_v5 = vor.u32 %v4475_v63, %v3474_v62  ;;  %v3454_v6 = vld [vmem:[%s6857_s3 + $0x178] sm:$0xf]  ;;  %v4568_v62 = vld [vmem:[%s6859_s5 + $0x1a0] sm:$0xf0] }
  0xc9   :  { %v3455_v14 = vor.u32 %v4470_v7, %v3454_v6  ;;  %v3835_v7 = vld [vmem:[%s6859_s5 + $0x180] sm:$0xf] }
  0xca   :  { %1201 = vmatpush.bf16.msra.mxu0 %v3271_v9  ;;  %1210 = vmatpush.bf16.msrb.mxu2 %v3511_v10  ;;  %v3703_v9 = vld [vmem:[%s6859_s5 + $0x78] sm:$0xf]  ;;  %v3776_v10 = vor.u32 %v4550_v4, %v3775_v3 }
  0xcb   :  { %v3991_v4 = vld [vmem:[%s6859_s5 + $0x2b8] sm:$0xf] }
  0xcc   :  { %1240 = vmatpush.bf16.msra.mxu3 %v3275_v16  ;;  %v4465_v16 = vld [vmem:[%s6857_s3 + $0x160] sm:$0xf0]  ;;  %s6886_s3 = sld [smem:[#allocation16_spill]] }
  0xcd   :  { %3638 = vmatmul.msk.bf16.vlgmr.msra.gmra.mxu2 %vm1057_vm2, %v5414_v55  ;;  %1202 = vmatmul.bf16.vlgmr.msra.gmra.mxu0 %v5412_v54 }
  0xce   :  { %1246 = vmatpush.bf16.msrb.mxu0 %v3575_v11  ;;  %1211 = vmatpush.bf16.msrb.mxu2 %v3491_v17  ;;  %v4532_v11 = vld [vmem:[%s6859_s5 + $0x80] sm:$0xf0] }
  0xcf   :  { %3639 = vmatmul.msk.bf16.vlgmr.msra.gmra.mxu1 %vm1057_vm2, %v5414_v55  ;;  %1241 = vmatmul.bf16.vlgmr.msra.gmra.mxu3 %v5412_v54  ;;  %v3908_v54 = vor.u32 %v4583_v35, %v3907_v39  ;;  %v3704_v17 = vor.u32 %v4532_v11, %v3703_v9  ;;  %v4537_v39 = vld [vmem:[%s6859_s5 + $0xac] sm:$0xf]  ;;  %v3729_v35 = vld [vmem:[%s6859_s5 + $0xb4] sm:$0xf0]  ;;  %v3693_v11 = vld [vmem:[%s6859_s5 + $0x6c] sm:$0xf0] }
  0xd0   :  { %2077 = vmatpush.bf16.msra.mxu1 %v3824_v25  ;;  %2090 = vmatpush.bf16.msrb.mxu3 %v3920_v36  ;;  %v3751_v25 = vld [vmem:[%s6859_s5 + $0xd8] sm:$0xf]  ;;  %v3871_v36 = vld [vmem:[%s6859_s5 + $0x1c8] sm:$0xf]  ;;  %v3732_v41 = vor.u32 %v4537_v39, %v3729_v35  ;;  %v3955_v35 = vld [vmem:[%s6859_s5 + $0x270] sm:$0xf] }
  0xd2   :  { %1247 = vmatpush.bf16.msrb.mxu0 %v3555_v20  ;;  %1212 = vmatpush.bf16.msrb.mxu2 %v3471_v28  ;;  %v3435_v20 = vor.u32 %v4465_v16, %v3434_v15  ;;  %v3752_v28 = vor.u32 %v4544_v26, %v3751_v25  ;;  %v3979_v15 = vld [vmem:[%s6859_s5 + $0x2a0] sm:$0xf]  ;;  %v4601_v16 = vld [vmem:[%s6859_s5 + $0x2a8] sm:$0xf0] }
  0xd4   :  { %2078 = vmatpush.bf16.msra.mxu1 %v3812_v38  ;;  %2091 = vmatpush.bf16.msrb.mxu3 %v3908_v54  ;;  %v4574_v38 = vld [vmem:[%s6859_s5 + $0x1d0] sm:$0xf0]  ;;  %v3655_v54 = vld [vmem:[%s6859_s5 + $0x18] sm:$0xf] }
  0xd5   :  { %v3872_v40 = vor.u32 %v4574_v38, %v3871_v36  ;;  %v4555_v36 = vld [vmem:[%s6859_s5 + $0x13c] sm:$0xf] }
  0xd6   :  { %1248 = vmatpush.bf16.msrb.mxu0 %v3535_v31  ;;  %1213 = vmatpush.bf16.msrb.mxu2 %v3451_v42  ;;  %v4523_v31 = vld [vmem:[%s6859_s5 + $0x38] sm:$0xf0]  ;;  %v4520_v42 = vld [vmem:[%s6859_s5 + $0x20] sm:$0xf0] }
  0xd7   :  { %v3656_v44 = vor.u32 %v4520_v42, %v3655_v54  ;;  %v4063_v42 = vld [vmem:[%s6859_s5 + $0x348] sm:$0xf] }
  0xd8   :  { %2079 = vmatpush.bf16.msra.mxu1 %v3800_v52  ;;  %2092 = vmatpush.bf16.msrb.mxu3 %v3896_v57  ;;  %v3720_v52 = vor.u32 %v4534_v50, %v3717_v51  ;;  %v4003_v57 = vld [vmem:[%s6859_s5 + $0x2d0] sm:$0xf] }
  0xda   :  { %1249 = vmatpush.bf16.msrb.mxu0 %v3515_v45  ;;  %1214 = vmatpush.bf16.msrb.mxu2 %v3431_v58  ;;  %v4610_v45 = vld [vmem:[%s6859_s5 + $0x2f0] sm:$0xf0]  ;;  %v3644_v58 = vor.u32 %v4517_v56, %v3643_v53  ;;  %v4592_v53 = vld [vmem:[%s6859_s5 + $0x260] sm:$0xf0] }
  0xdb   :  { %v4016_v48 = vor.u32 %v4610_v45, %v4015_v43  ;;  %v4622_v43 = vld [vmem:[%s6859_s5 + $0x350] sm:$0xf0] }
  0xdc   :  { %2080 = vmatpush.bf16.msra.mxu1 %v3788_v1  ;;  %2093 = vmatpush.bf16.msrb.mxu3 %v3884_v30  ;;  %v4531_v1 = vld [vmem:[%s6859_s5 + $0x7c] sm:$0xf]  ;;  %v4064_v45 = vor.u32 %v4622_v43, %v4063_v42 }
  0xdd   :  { %1215 = vmatmul.bf16.vlgmr.msrb.gmra.mxu2 %v5420_v59  ;;  %v3708_v3 = vor.u32 %v4531_v1, %v3705_v2  ;;  %v3777_v1 = vld [vmem:[%s6859_s5 + $0x114] sm:$0xf0] }
  0xde   :  { %1250 = vmatpush.bf16.msrb.mxu0 %v3495_v60  ;;  %2064 = vmatpush.bf16.msra.mxu2 %v3728_v61  ;;  %v4607_v60 = vld [vmem:[%s6859_s5 + $0x2d8] sm:$0xf0]  ;;  %v3847_v61 = vld [vmem:[%s6859_s5 + $0x198] sm:$0xf] }
  0xdf   :  { %3640 = vmatmul.msk.bf16.vlgmr.msrb.gmra.mxu1 %vm1057_vm2, %v5414_v55  ;;  %v4529_v55 = vld [vmem:[%s6859_s5 + $0x68] sm:$0xf0]  ;;  %v4004_v63 = vor.u32 %v4607_v60, %v4003_v57  ;;  %v3848_v0 = vor.u32 %v4568_v62, %v3847_v61  ;;  %v4051_v57 = vld [vmem:[%s6859_s5 + $0x330] sm:$0xf]  ;;  %v4516_v60 = vld [vmem:[%s6859_s5 + $0x4] sm:$0xf] }
  0xe0   :  { %2081 = vmatpush.bf16.msra.mxu1 %v3776_v10  ;;  %v3692_v21 = vor.u32 %v4529_v55, %v3691_v19  ;;  %2094 = vmatpush.bf16.msrb.mxu3 %v3872_v40  ;;  %v4528_v10 = vld [vmem:[%s6859_s5 + $0x64] sm:$0xf]  ;;  %v5858_v19 = vld [vmem:[%s6859_s5 + $0x378] sm:$0xff]  ;;  %v4525_v55 = vld [vmem:[%s6859_s5 + $0x4c] sm:$0xf] }
  0xe1   :  { %v3696_v13 = vor.u32 %v4528_v10, %v3693_v11  ;;  %v4595_v40 = vld [vmem:[%s6859_s5 + $0x278] sm:$0xf0]  ;;  %v3921_v10 = vld [vmem:[%s6859_s5 + $0x234] sm:$0xf0] }
  0xe2   :  { %1251 = vmatpush.bf16.msrb.mxu0 %v3475_v5  ;;  %2065 = vmatpush.bf16.msra.mxu2 %v3716_v8  ;;  %v4604_v5 = vld [vmem:[%s6859_s5 + $0x2c0] sm:$0xf0]  ;;  %v4565_v8 = vld [vmem:[%s6859_s5 + $0x188] sm:$0xf0]  ;;  %v3956_v54 = vor.u32 %v4595_v40, %v3955_v35 }
  0xe3   :  { %v3992_v6 = vor.u32 %v4604_v5, %v3991_v4  ;;  %v3836_v9 = vor.u32 %v4565_v8, %v3835_v7  ;;  %v4589_v7 = vld [vmem:[%s6859_s5 + $0x248] sm:$0xf0]  ;;  %v4540_v40 = vld [vmem:[%s6859_s5 + $0xc4] sm:$0xf] }
  0xe4   :  { %2082 = vmatpush.bf16.msra.mxu1 %v3764_v18  ;;  %2095 = vmatpush.bf16.msrb.mxu3 %v3860_v49  ;;  %v3980_v18 = vor.u32 %v4601_v16, %v3979_v15  ;;  %v3765_v16 = vld [vmem:[%s6859_s5 + $0xfc] sm:$0xf0] }
  0xe6   :  { %1252 = vmatpush.bf16.msrb.mxu0 %v3455_v14  ;;  %2066 = vmatpush.bf16.msra.mxu2 %v3704_v17  ;;  %v3825_v14 = vld [vmem:[%s6859_s5 + $0x174] sm:$0xf0] }
  0xe7   :  { %v3828_v17 = vor.u32 %v4561_v12, %v3825_v14  ;;  %v4039_v12 = vld [vmem:[%s6859_s5 + $0x318] sm:$0xf]  ;;  %v4546_v14 = vld [vmem:[%s6859_s5 + $0xf4] sm:$0xf] }
  0xe8   :  { %2083 = vmatpush.bf16.msra.mxu1 %v3752_v28  ;;  %2096 = vmatpush.bf16.msrb.mxu3 %v3848_v0  ;;  %v4598_v28 = vld [vmem:[%s6859_s5 + $0x290] sm:$0xf0]  ;;  %v4549_v0 = vld [vmem:[%s6859_s5 + $0x10c] sm:$0xf] }
  0xe9   :  { %v3968_v30 = vor.u32 %v4598_v28, %v3967_v27  ;;  %v3780_v5 = vor.u32 %v4549_v0, %v3777_v1  ;;  %v4600_v1 = vld [vmem:[%s6859_s5 + $0x2a4] sm:$0xf] }
  0xea   :  { %1253 = vmatpush.bf16.msrb.mxu0 %v3435_v20  ;;  %2067 = vmatpush.bf16.msra.mxu2 %v3692_v21  ;;  %v3681_v20 = vld [vmem:[%s6859_s5 + $0x54] sm:$0xf0]  ;;  %v1822_v21 = vunpack.c.l.b16 %v5858_v19 }
  0xeb   :  { %v3684_v22 = vor.u32 %v4525_v55, %v3681_v20  ;;  %v4582_v20 = vld [vmem:[%s6859_s5 + $0x214] sm:$0xf] }
  0xec   :  { %2084 = vmatpush.bf16.msra.mxu1 %v3740_v37  ;;  %2097 = vmatpush.bf16.msrb.mxu3 %v3836_v9  ;;  %v1936_v26 = vpack.c.b16 %v1822_v21, %v1822_v21  ;;  %v3801_v37 = vld [vmem:[%s6859_s5 + $0x144] sm:$0xf0]  ;;  %v4585_v9 = vld [vmem:[%s6859_s5 + $0x22c] sm:$0xf]  ;;  %v3909_v21 = vld [vmem:[%s6859_s5 + $0x21c] sm:$0xf0] }
  0xed   :  { %1254 = vmatmul.bf16.vlgmr.msrb.gmra.mxu0 %v5420_v59  ;;  %v3667_v59 = vld [vmem:[%s6859_s5 + $0x30] sm:$0xf]  ;;  %v3804_v39 = vor.u32 %v4555_v36, %v3801_v37  ;;  %v3924_v11 = vor.u32 %v4585_v9, %v3921_v10  ;;  %v4579_v36 = vld [vmem:[%s6859_s5 + $0x1fc] sm:$0xf]  ;;  %v3897_v37 = vld [vmem:[%s6859_s5 + $0x204] sm:$0xf0] }
  0xee   :  { %2068 = vmatpush.bf16.msra.mxu2 %v3680_v24  ;;  %v3668_v32 = vor.u32 %v4523_v31, %v3667_v59  ;;  %2103 = vmatpush.bf16.msra.mxu0 %v4016_v48  ;;  %v3813_v24 = vld [vmem:[%s6859_s5 + $0x15c] sm:$0xf0]  ;;  %v2056_v29 = vsel %vm2054_vm3, %v1936_v26, 0  ;;  %v4625_v31 = vld [vmem:[%s6859_s5 + $0x368] sm:$0xf0]  ;;  %v3900_v35 = vor.u32 %v4579_v36, %v3897_v37 }
  0xef   :  { %v3816_v25 = vor.u32 %v4558_v23, %v3813_v24  ;;  %v4075_v59 = vld [vmem:[%s6859_s5 + $0x360] sm:$0xf]  ;;  %v3789_v48 = vld [vmem:[%s6859_s5 + $0x12c] sm:$0xf0]  ;;  %v3912_v23 = vor.u32 %v4582_v20, %v3909_v21  ;;  %v4543_v26 = vld [vmem:[%s6859_s5 + $0xdc] sm:$0xf] }
  0xf0   :  { %2129 = vmatpush.bf16.msrb.mxu1 %v3732_v41  ;;  %2142 = vmatpush.bf16.msra.mxu3 %v3828_v17  ;;  %v4076_v33 = vor.u32 %v4625_v31, %v4075_v59  ;;  %v5907_v41 = vld [vmem:[%s6858_s4] sm:$0x1f]  ;;  %v3792_v51 = vor.u32 %v4552_v47, %v3789_v48  ;;  %v4609_v59 = vld [vmem:[%s6859_s5 + $0x2ec] sm:$0xf]  ;;  %v4017_v31 = vld [vmem:[%s6859_s5 + $0x2f4] sm:$0xf0] }
  0xf1   :  { %v558_v49 = vperm.slane %v5907_v41, 0  ;;  %v4027_v24 = vld [vmem:[%s6859_s5 + $0x300] sm:$0xf]  ;;  %v4576_v47 = vld [vmem:[%s6859_s5 + $0x1e4] sm:$0xf] }
  0xf2   :  { %2069 = vmatpush.bf16.msra.mxu2 %v3668_v32  ;;  %2104 = vmatpush.bf16.msra.mxu0 %v4004_v63  ;;  %v4522_v32 = vld [vmem:[%s6859_s5 + $0x34] sm:$0xf]  ;;  %v3645_v63 = vld [vmem:[%s6859_s5 + $0xc] sm:$0xf0]  ;;  %v4591_v36 = vld [vmem:[%s6859_s5 + $0x25c] sm:$0xf] }
  0xf3   :  { %v3672_v38 = vor.u32 %v4522_v32, %v3669_v34  ;;  %v3648_v4 = vor.u32 %v4516_v60, %v3645_v63  ;;  %v3885_v48 = vld [vmem:[%s6859_s5 + $0x1ec] sm:$0xf0]  ;;  %v4573_v60 = vld [vmem:[%s6859_s5 + $0x1cc] sm:$0xf]  ;;  %v4594_v21 = vld [vmem:[%s6859_s5 + $0x274] sm:$0xf] }
  0xf4   :  { %2130 = vmatpush.bf16.msrb.mxu1 %v3720_v52  ;;  %2143 = vmatpush.bf16.msra.mxu3 %v3816_v25  ;;  %v3943_v52 = vld [vmem:[%s6859_s5 + $0x258] sm:$0xf]  ;;  %v4613_v25 = vld [vmem:[%s6859_s5 + $0x308] sm:$0xf0]  ;;  %v3945_v37 = vld [vmem:[%s6859_s5 + $0x264] sm:$0xf0] }
  0xf5   :  { %v3944_v56 = vor.u32 %v4592_v53, %v3943_v52 }
  0xf6   :  { %2070 = vmatpush.bf16.msra.mxu2 %v3656_v44  ;;  %2105 = vmatpush.bf16.msra.mxu0 %v3992_v6  ;;  %v4519_v44 = vld [vmem:[%s6859_s5 + $0x1c] sm:$0xf]  ;;  %v3931_v6 = vld [vmem:[%s6859_s5 + $0x240] sm:$0xf] }
  0xf7   :  { %v3660_v50 = vor.u32 %v4519_v44, %v3657_v46  ;;  %v3932_v8 = vor.u32 %v4589_v7, %v3931_v6  ;;  %v4606_v44 = vld [vmem:[%s6859_s5 + $0x2d4] sm:$0xf] }
  0xf8   :  { %2131 = vmatpush.bf16.msrb.mxu1 %v3708_v3  ;;  %2144 = vmatpush.bf16.msra.mxu3 %v3804_v39  ;;  %v4020_v39 = vor.u32 %v4609_v59, %v4017_v31  ;;  %v3837_v59 = vld [vmem:[%s6859_s5 + $0x18c] sm:$0xf0] }
  0xfa   :  { %2071 = vmatpush.bf16.msra.mxu2 %v3644_v58  ;;  %2106 = vmatpush.bf16.msra.mxu0 %v3980_v18  ;;  %v4619_v58 = vld [vmem:[%s6859_s5 + $0x338] sm:$0xf0]  ;;  %v3768_v18 = vor.u32 %v4546_v14, %v3765_v16 }
  0xfb   :  { %v4052_v62 = vor.u32 %v4619_v58, %v4051_v57  ;;  %v3993_v57 = vld [vmem:[%s6859_s5 + $0x2c4] sm:$0xf0]  ;;  %v4567_v16 = vld [vmem:[%s6859_s5 + $0x19c] sm:$0xf] }
  0xfc   :  { %2132 = vmatpush.bf16.msrb.mxu1 %v3696_v13  ;;  %2145 = vmatpush.bf16.msra.mxu3 %v3792_v51  ;;  %v4616_v13 = vld [vmem:[%s6859_s5 + $0x320] sm:$0xf0]  ;;  %v3888_v51 = vor.u32 %v4576_v47, %v3885_v48 }
  0xfd   :  { %v4040_v15 = vor.u32 %v4616_v13, %v4039_v12  ;;  %v3969_v12 = vld [vmem:[%s6859_s5 + $0x294] sm:$0xf0] }
  0xfe   :  { %2118 = vmatpush.bf16.msrb.mxu2 %v2056_v29  ;;  %2107 = vmatpush.bf16.msra.mxu0 %v3968_v30  ;;  %v4028_v29 = vor.u32 %v4613_v25, %v4027_v24  ;;  %v3753_v30 = vld [vmem:[%s6859_s5 + $0xe4] sm:$0xf0]  ;;  %v560_v24 = vperm.slane %v5907_v41, 2 }
  0xff   :  { %v3756_v34 = vor.u32 %v4543_v26, %v3753_v30  ;;  %v4624_v26 = vld [vmem:[%s6859_s5 + $0x364] sm:$0xf] }
 0x100   :  { %2133 = vmatpush.bf16.msrb.mxu1 %v3684_v22  ;;  %2146 = vmatpush.bf16.msra.mxu3 %v3780_v5  ;;  %v4570_v5 = vld [vmem:[%s6859_s5 + $0x1b4] sm:$0xf]  ;;  %v4564_v30 = vld [vmem:[%s6859_s5 + $0x184] sm:$0xf] }
 0x102   :  { %2119 = vmatpush.bf16.msrb.mxu2 %v4076_v33  ;;  %2108 = vmatpush.bf16.msra.mxu0 %v3956_v54  ;;  %v3741_v54 = vld [vmem:[%s6859_s5 + $0xcc] sm:$0xf0] }
 0x103   :  { %v3744_v43 = vor.u32 %v4540_v40, %v3741_v54  ;;  %v4621_v40 = vld [vmem:[%s6859_s5 + $0x34c] sm:$0xf]  ;;  %v4065_v54 = vld [vmem:[%s6859_s5 + $0x354] sm:$0xf0] }
 0x104   :  { %2134 = vmatpush.bf16.msrb.mxu1 %v3672_v38  ;;  %2147 = vmatpush.bf16.msra.mxu3 %v3768_v18  ;;  %v4068_v47 = vor.u32 %v4621_v40, %v4065_v54 }
 0x106   :  { %2120 = vmatpush.bf16.msrb.mxu2 %v4064_v45  ;;  %2109 = vmatpush.bf16.msra.mxu0 %v3944_v56  ;;  %v4005_v45 = vld [vmem:[%s6859_s5 + $0x2dc] sm:$0xf0]  ;;  %v4603_v56 = vld [vmem:[%s6859_s5 + $0x2bc] sm:$0xf] }
 0x107   :  { %v3996_v63 = vor.u32 %v4603_v56, %v3993_v57  ;;  %v3735_v56 = vld [vmem:[%s6859_s5 + $0xb0] sm:$0xf]  ;;  %v4539_v57 = vld [vmem:[%s6859_s5 + $0xb8] sm:$0xf0] }
 0x108   :  { %2135 = vmatpush.bf16.msrb.mxu1 %v3660_v50  ;;  %2148 = vmatpush.bf16.msra.mxu3 %v3756_v34  ;;  %v4008_v50 = vor.u32 %v4606_v44, %v4005_v45  ;;  %v4588_v44 = vld [vmem:[%s6859_s5 + $0x244] sm:$0xf]  ;;  %v3933_v45 = vld [vmem:[%s6859_s5 + $0x24c] sm:$0xf0] }
 0x10a   :  { %2121 = vmatpush.bf16.msrb.mxu2 %v4052_v62  ;;  %2110 = vmatpush.bf16.msra.mxu0 %v3932_v8  ;;  %v3861_v8 = vld [vmem:[%s6859_s5 + $0x1bc] sm:$0xf0] }
 0x10c   :  { %2136 = vmatpush.bf16.msrb.mxu1 %v3648_v4  ;;  %2149 = vmatpush.bf16.msra.mxu3 %v3744_v43  ;;  %v3948_v43 = vor.u32 %v4591_v36, %v3945_v37 }
 0x10e   :  { %2155 = vmatpush.bf16.msrb.mxu0 %v3924_v11  ;;  %2122 = vmatpush.bf16.msrb.mxu2 %v4040_v15  ;;  %v3864_v11 = vor.u32 %v4570_v5, %v3861_v8  ;;  %v4536_v5 = vld [vmem:[%s6859_s5 + $0xa0] sm:$0xf0] }
 0x10f   :  { %v4612_v8 = vld [vmem:[%s6859_s5 + $0x304] sm:$0xf] }
 0x112   :  { %2156 = vmatpush.bf16.msrb.mxu0 %v3912_v23  ;;  %2123 = vmatpush.bf16.msrb.mxu2 %v4028_v29  ;;  %v4077_v29 = vld [vmem:[%s6859_s5 + $0x36c] sm:$0xf0] }
 0x116   :  { %2157 = vmatpush.bf16.msrb.mxu0 %v3900_v35 }
 0x11a   :  { %2158 = vmatpush.bf16.msrb.mxu0 %v3888_v51 }
 0x12a   :  { %v1086_v61 = vpop.f32.mrf.mxu0 }
 0x12b   :  { %v1087_v2 = vadd.f32 %v1086_v61, %v558_v49  ;;  %v1099_v3 = vpop.f32.mrf.mxu1  ;;  %v559_v49 = vperm.slane %v5907_v41, 1  ;;  %v3873_v61 = vld [vmem:[%s6859_s5 + $0x1d4] sm:$0xf0] }
 0x12c   :  { %v3876_v0 = vor.u32 %v4573_v60, %v3873_v61 }
 0x12d   :  { %v1100_v17 = vadd.f32 %v1099_v3, %v1087_v2  ;;  %v3981_v2 = vld [vmem:[%s6859_s5 + $0x2ac] sm:$0xf0]  ;;  %v1823_v3 = vunpack.c.h.b16 %v5858_v19  ;;  %v4597_v19 = vld [vmem:[%s6859_s5 + $0x28c] sm:$0xf] }
 0x12e   :  { %2159 = vmatpush.bf16.msrb.mxu0 %v3876_v0  ;;  %v3984_v7 = vor.u32 %v4600_v1, %v3981_v2  ;;  %v4041_v0 = vld [vmem:[%s6859_s5 + $0x324] sm:$0xf0]  ;;  %v3736_v2 = vor.u32 %v4539_v57, %v3735_v56  ;;  %v3819_v56 = vld [vmem:[%s6859_s5 + $0x158] sm:$0xf]  ;;  %v4560_v57 = vld [vmem:[%s6859_s5 + $0x160] sm:$0xf0] }
 0x12f   :  { %v1937_v14 = vpack.c.b16 %v1823_v3, %v1823_v3 }
 0x130   :  { %v1112_v55 = vpop.f32.mrf.mxu2 }
 0x131   :  { %v1113_v22 = vadd.f32 %v1112_v55, %v1100_v17  ;;  %v3849_v17 = vld [vmem:[%s6859_s5 + $0x1a4] sm:$0xf0]  ;;  %v3972_v55 = vor.u32 %v4597_v19, %v3969_v12  ;;  %v2059_v25 = vsel %vm2054_vm3, %v1937_v14, 0  ;;  %v4611_v19 = vld [vmem:[%s6859_s5 + $0x2f8] sm:$0xf0]  ;;  %v561_v14 = vperm.slane %v5907_v41, 3 }
 0x132   :  { %v1088_v27 = vpop.f32.mrf.mxu0  ;;  %v1125_v28 = vpop.f32.mrf.mxu3  ;;  %2160 = vmatpush.bf16.msrb.mxu0 %v3864_v11  ;;  %v3852_v20 = vor.u32 %v4567_v16, %v3849_v17  ;;  %v4023_v11 = vld [vmem:[%s6859_s5 + $0x2f0] sm:$0xf]  ;;  %v3711_v12 = vld [vmem:[%s6859_s5 + $0x80] sm:$0xf] }
 0x133   :  { %vm1272_vm4 = vcmp.ge.f32.partialorder %v1113_v22, 0.0  ;;  %v1277_v32 = vmul.f32 10.0, %v1113_v22  ;;  %v1101_v33 = vpop.f32.mrf.mxu1  ;;  %v1126_v62 = vadd.f32 %v1125_v28, %v559_v49  ;;  %v4618_v49 = vld [vmem:[%s6859_s5 + $0x334] sm:$0xf] }
 0x135   :  { %v1282_v38 = vsel %vm1272_vm4, %v1113_v22, %v1277_v32  ;;  %v3957_v22 = vld [vmem:[%s6859_s5 + $0x27c] sm:$0xf0]  ;;  %v3840_v32 = vor.u32 %v4564_v30, %v3837_v59 }
 0x136   :  { %v6012_v42 = vpack.c.bf16 %v1282_v38, %v1282_v38  ;;  %2161 = vmatpush.bf16.msrb.mxu0 %v3852_v20  ;;  %v3960_v31 = vor.u32 %v4594_v21, %v3957_v22  ;;  %v4011_v20 = vld [vmem:[%s6859_s5 + $0x2d8] sm:$0xf]  ;;  %v4608_v21 = vld [vmem:[%s6859_s5 + $0x2e0] sm:$0xf0]  ;;  %v3699_v22 = vld [vmem:[%s6859_s5 + $0x68] sm:$0xf] }
 0x137   :  { %v3999_v59 = vld [vmem:[%s6859_s5 + $0x2c0] sm:$0xf] }
 0x138   :  { %v1114_v46 = vpop.f32.mrf.mxu2  ;;  %2072 = vmatmul.bf16.vlgmr.msra.gmra.mxu2 %v6012_v42 }
 0x139   :  { %2168 = vmatpush.bf16.msra.mxu2 %v4020_v39  ;;  %v4080_v39 = vor.u32 %v4624_v26, %v4077_v29 }
 0x13a   :  { %v1151_v52 = vpop.f32.mrf.mxu0  ;;  %v1127_v53 = vpop.f32.mrf.mxu3  ;;  %2162 = vmatpush.bf16.msrb.mxu0 %v3840_v32  ;;  %v3687_v32 = vld [vmem:[%s6859_s5 + $0x50] sm:$0xf] }
 0x13c   :  { %v1164_v58 = vpop.f32.mrf.mxu1 }
 0x13d   :  { %2169 = vmatpush.bf16.msra.mxu2 %v4008_v50  ;;  %v1165_v38 = vadd.f32 %v1164_v58, %v560_v24  ;;  %v4053_v50 = vld [vmem:[%s6859_s5 + $0x33c] sm:$0xf0] }
 0x13e   :  { %v4056_v60 = vor.u32 %v4618_v49, %v4053_v50  ;;  %v1441_v49 = vld [vmem:[%s6859_s5 + $0x380] sm:$0xf] }
 0x140   :  { %v1138_v4 = vpop.f32.mrf.mxu2 }
 0x141   :  { %v1139_v6 = vadd.f32 %v1138_v4, %v1126_v62  ;;  %2170 = vmatpush.bf16.msra.mxu2 %v3996_v63  ;;  %v4615_v63 = vld [vmem:[%s6859_s5 + $0x31c] sm:$0xf]  ;;  %v3723_v4 = vld [vmem:[%s6859_s5 + $0x98] sm:$0xf] }
 0x142   :  { %v1153_v9 = vpop.f32.mrf.mxu0  ;;  %v1177_v10 = vpop.f32.mrf.mxu3 }
 0x143   :  { %v1152_v13 = vadd.f32 %v1151_v52, %v1139_v6  ;;  %v1178_v46 = vadd.f32 %v1177_v10, %v1165_v38  ;;  %v3936_v52 = vor.u32 %v4588_v44, %v3933_v45  ;;  %v4044_v6 = vor.u32 %v4615_v63, %v4041_v0  ;;  %v4029_v9 = vld [vmem:[%s6859_s5 + $0x30c] sm:$0xf0]  ;;  %v3675_v44 = vld [vmem:[%s6859_s5 + $0x38] sm:$0xf]  ;;  %v4524_v45 = vld [vmem:[%s6859_s5 + $0x40] sm:$0xf0] }
 0x144   :  { %v1166_v15 = vpop.f32.mrf.mxu1  ;;  %v3724_v10 = vor.u32 %v4536_v5, %v3723_v4  ;;  %v3831_v38 = vld [vmem:[%s6859_s5 + $0x170] sm:$0xf]  ;;  %v3663_v63 = vld [vmem:[%s6859_s5 + $0x20] sm:$0xf]  ;;  %v1824_v0 = vunpack.c.l.b16 %v1441_v49  ;;  %v4587_v5 = vld [vmem:[%s6859_s5 + $0x238] sm:$0xf0] }
 0x145   :  { %vm1273_vm5 = vcmp.ge.f32.partialorder %v1152_v13, 0.0  ;;  %v1278_v18 = vmul.f32 10.0, %v1152_v13  ;;  %2171 = vmatpush.bf16.msra.mxu2 %v3984_v7  ;;  %v4032_v15 = vor.u32 %v4612_v8, %v4029_v9  ;;  %v3927_v4 = vld [vmem:[%s6859_s5 + $0x230] sm:$0xf]  ;;  %v3807_v8 = vld [vmem:[%s6859_s5 + $0x140] sm:$0xf] }
 0x146   :  { %v4557_v9 = vld [vmem:[%s6859_s5 + $0x148] sm:$0xf0]  ;;  %v4548_v49 = vld [vmem:[%s6859_s5 + $0x100] sm:$0xf0] }
 0x147   :  { %v1283_v23 = vsel %vm1273_vm5, %v1152_v13, %v1278_v18  ;;  %v4533_v13 = vld [vmem:[%s6859_s5 + $0x88] sm:$0xf0]  ;;  %v4024_v18 = vor.u32 %v4611_v19, %v4023_v11  ;;  %v4596_v11 = vld [vmem:[%s6859_s5 + $0x280] sm:$0xf0] }
 0x148   :  { %v6076_v27 = vpack.c.bf16 %v1283_v23, %v1283_v23  ;;  %v1140_v28 = vpop.f32.mrf.mxu2  ;;  %v4530_v23 = vld [vmem:[%s6859_s5 + $0x70] sm:$0xf0] }
 0x149   :  { %2172 = vmatpush.bf16.msra.mxu2 %v3972_v55  ;;  %v3712_v55 = vor.u32 %v4533_v13, %v3711_v12  ;;  %v4012_v28 = vor.u32 %v4608_v21, %v4011_v20  ;;  %v3700_v30 = vor.u32 %v4530_v23, %v3699_v22  ;;  %v3928_v13 = vor.u32 %v4587_v5, %v3927_v4  ;;  %v3915_v20 = vld [vmem:[%s6859_s5 + $0x218] sm:$0xf]  ;;  %v4584_v21 = vld [vmem:[%s6859_s5 + $0x220] sm:$0xf0]  ;;  %v3795_v23 = vld [vmem:[%s6859_s5 + $0x128] sm:$0xf] }
 0x14a   :  { %2085 = vmatmul.bf16.vlgmr.msra.gmra.mxu1 %v6076_v27  ;;  %v6088_v33 = vpop.f32.mrf.mxu0  ;;  %v1179_v34 = vpop.f32.mrf.mxu3  ;;  %v4047_v4 = vld [vmem:[%s6859_s5 + $0x320] sm:$0xf]  ;;  %v4617_v5 = vld [vmem:[%s6859_s5 + $0x328] sm:$0xf0] }
 0x14b   :  { %2183 = vmatpush.bf16.msra.mxu1 %v2059_v25  ;;  %v1204_v24 = vadd.f32 %v6088_v33, %v561_v14  ;;  %v562_v25 = vperm.slane %v5907_v41, 4  ;;  %v4527_v41 = vld [vmem:[%s6859_s5 + $0x58] sm:$0xf0]  ;;  %v3651_v14 = vld [vmem:[%s6859_s5 + $0x8] sm:$0xf] }
 0x14c   :  { %v6096_v35 = vpop.f32.mrf.mxu1  ;;  %v3688_v54 = vor.u32 %v4527_v41, %v3687_v32  ;;  %v4581_v32 = vld [vmem:[%s6859_s5 + $0x208] sm:$0xf0]  ;;  %v4083_v41 = vld [vmem:[%s6859_s5 + $0x368] sm:$0xf] }
 0x14d   :  { %2173 = vmatpush.bf16.msra.mxu2 %v3960_v31  ;;  %v4605_v31 = vld [vmem:[%s6859_s5 + $0x2c8] sm:$0xf0] }
 0x14e   :  { %v4000_v37 = vor.u32 %v4605_v31, %v3999_v59  ;;  %v3903_v31 = vld [vmem:[%s6859_s5 + $0x200] sm:$0xf] }
 0x14f   :  { %2184 = vmatpush.bf16.msra.mxu1 %v4080_v39  ;;  %v4563_v39 = vld [vmem:[%s6859_s5 + $0x178] sm:$0xf0] }
 0x150   :  { %v1190_v48 = vpop.f32.mrf.mxu2 }
 0x151   :  { %v1191_v51 = vadd.f32 %v1190_v48, %v1178_v46  ;;  %2174 = vmatpush.bf16.msra.mxu2 %v3948_v43  ;;  %v4602_v43 = vld [vmem:[%s6859_s5 + $0x2b0] sm:$0xf0]  ;;  %v3832_v48 = vor.u32 %v4563_v39, %v3831_v38  ;;  %v3939_v38 = vld [vmem:[%s6859_s5 + $0x248] sm:$0xf] }
 0x152   :  { %v1205_v53 = vpop.f32.mrf.mxu0  ;;  %v1242_v61 = vpop.f32.mrf.mxu3  ;;  %v4590_v39 = vld [vmem:[%s6859_s5 + $0x250] sm:$0xf0] }
 0x153   :  { %vm1274_vm6 = vcmp.ge.f32.partialorder %v1191_v51, 0.0  ;;  %v1279_v58 = vmul.f32 10.0, %v1191_v51  ;;  %2185 = vmatpush.bf16.msra.mxu1 %v4068_v47  ;;  %v1243_v34 = vadd.f32 %v1242_v61, %v562_v25  ;;  %v4599_v61 = vld [vmem:[%s6859_s5 + $0x298] sm:$0xf0]  ;;  %v3951_v25 = vld [vmem:[%s6859_s5 + $0x260] sm:$0xf] }
 0x154   :  { %v1231_v62 = vpop.f32.mrf.mxu1 }
 0x155   :  { %v1284_v1 = vsel %vm1274_vm6, %v1191_v51, %v1279_v58  ;;  %2175 = vmatpush.bf16.msra.mxu2 %v3936_v52  ;;  %v3676_v58 = vor.u32 %v4524_v45, %v3675_v44  ;;  %v4578_v44 = vld [vmem:[%s6859_s5 + $0x1f0] sm:$0xf0]  ;;  %v4071_v45 = vld [vmem:[%s6859_s5 + $0x350] sm:$0xf] }
 0x156   :  { %v6128_v3 = vpack.c.bf16 %v1284_v1, %v1284_v1  ;;  %v3820_v1 = vor.u32 %v4560_v57, %v3819_v56  ;;  %v3879_v56 = vld [vmem:[%s6859_s5 + $0x1d0] sm:$0xf]  ;;  %v4575_v57 = vld [vmem:[%s6859_s5 + $0x1d8] sm:$0xf0] }
 0x157   :  { %2186 = vmatpush.bf16.msra.mxu1 %v4056_v60  ;;  %v3975_v60 = vld [vmem:[%s6859_s5 + $0x290] sm:$0xf] }
 0x158   :  { %v1192_v7 = vpop.f32.mrf.mxu2  ;;  %2098 = vmatmul.bf16.vlgmr.msrb.gmra.mxu3 %v6128_v3 }
 0x159   :  { %2194 = vmatpush.bf16.msrb.mxu3 %v3736_v2  ;;  %v4521_v2 = vld [vmem:[%s6859_s5 + $0x28] sm:$0xf0]  ;;  %v3976_v7 = vor.u32 %v4599_v61, %v3975_v60  ;;  %v3759_v60 = vld [vmem:[%s6859_s5 + $0xe0] sm:$0xf] }
 0x15a   :  { %2137 = vmatmul.bf16.vlgmr.msrb.gmra.mxu1 %v6012_v42  ;;  %v1244_v16 = vpop.f32.mrf.mxu3  ;;  %v3664_v12 = vor.u32 %v4521_v2, %v3663_v63  ;;  %v4545_v61 = vld [vmem:[%s6859_s5 + $0xe8] sm:$0xf0]  ;;  %v4572_v2 = vld [vmem:[%s6859_s5 + $0x1c0] sm:$0xf0] }
 0x15b   :  { %2187 = vmatpush.bf16.msra.mxu1 %v4044_v6 }
 0x15c   :  { %v1268_v17 = vpop.f32.mrf.mxu1 }
 0x15d   :  { %2195 = vmatpush.bf16.msrb.mxu3 %v3724_v10  ;;  %v3963_v10 = vld [vmem:[%s6859_s5 + $0x278] sm:$0xf] }
 0x15e   :  { %v3964_v22 = vor.u32 %v4596_v11, %v3963_v10  ;;  %v3855_v11 = vld [vmem:[%s6859_s5 + $0x1a0] sm:$0xf] }
 0x15f   :  { %2188 = vmatpush.bf16.msra.mxu1 %v4032_v15  ;;  %v1938_v15 = vpack.c.b16 %v1824_v0, %v1824_v0  ;;  %v3760_v0 = vor.u32 %v4545_v61, %v3759_v60  ;;  %v4630_v60 = vld [vmem:[%s6881_s10 + $0x1c] sm:$0xf] }
 0x160   :  { %v1216_v26 = vpop.f32.mrf.mxu2 }
 0x161   :  { %v1217_v29 = vadd.f32 %v1216_v26, %v1204_v24  ;;  %2196 = vmatpush.bf16.msrb.mxu3 %v3712_v55  ;;  %v4518_v55 = vld [vmem:[%s6859_s5 + $0x10] sm:$0xf0]  ;;  %v4593_v26 = vld [vmem:[%s6859_s5 + $0x268] sm:$0xf0] }
 0x162   :  { %v4554_v24 = vld [vmem:[%s6859_s5 + $0x130] sm:$0xf0] }
 0x163   :  { %2233 = vmatpush.bf16.msrb.mxu1 %v4024_v18  ;;  %v1230_v33 = vadd.f32 %v6096_v35, %v1217_v29  ;;  %v3987_v35 = vld [vmem:[%s6859_s5 + $0x2a8] sm:$0xf]  ;;  %v3808_v18 = vor.u32 %v4557_v9, %v3807_v8  ;;  %v3916_v29 = vor.u32 %v4584_v21, %v3915_v20  ;;  %v3796_v59 = vor.u32 %v4554_v24, %v3795_v23  ;;  %v4176_v20 = vld [vmem:[%s6881_s10 + $0xb4] sm:$0xf0] }
 0x164   :  { %v1270_v36 = vpop.f32.mrf.mxu1  ;;  %v3988_v53 = vor.u32 %v4602_v43, %v3987_v35  ;;  %v3891_v43 = vld [vmem:[%s6859_s5 + $0x1e8] sm:$0xf]  ;;  %v4048_v9 = vor.u32 %v4617_v5, %v4047_v4  ;;  %v4234_v4 = vld [vmem:[%s6881_s10 + $0x120] sm:$0xf]  ;;  %v4664_v5 = vld [vmem:[%s6881_s10 + $0x128] sm:$0xf0] }
 0x165   :  { %vm1275_vm7 = vcmp.ge.f32.partialorder %v1230_v33, 0.0  ;;  %v1280_v40 = vmul.f32 10.0, %v1230_v33  ;;  %2197 = vmatpush.bf16.msrb.mxu3 %v3700_v30  ;;  %v2062_v30 = vsel %vm2054_vm3, %v1938_v15, 0  ;;  %v3783_v36 = vld [vmem:[%s6859_s5 + $0x110] sm:$0xf]  ;;  %vm3078_vm3 = vcmask 9216  }
 0x166   :  { %v3843_v15 = vld [vmem:[%s6859_s5 + $0x188] sm:$0xf] }
 0x167   :  { %2234 = vmatpush.bf16.msrb.mxu1 %v4012_v28  ;;  %v1285_v46 = vsel %vm1275_vm7, %v1230_v33, %v1280_v40  ;;  %v3652_v28 = vor.u32 %v4518_v55, %v3651_v14  ;;  %v3952_v33 = vor.u32 %v4593_v26, %v3951_v25  ;;  %v3904_v40 = vor.u32 %v4581_v32, %v3903_v31  ;;  %v4648_v55 = vld [vmem:[%s6881_s10 + $0xac] sm:$0xf]  ;;  %v4152_v23 = vld [vmem:[%s6881_s10 + $0x84] sm:$0xf0]  ;;  %v4162_v32 = vld [vmem:[%s6881_s10 + $0x90] sm:$0xf] }
 0x168   :  { %v6205_v50 = vpack.c.bf16 %v1285_v46, %v1285_v46  ;;  %2150 = vmatmul.bf16.vlgmr.msra.gmra.mxu3 %v6076_v27  ;;  %v1218_v52 = vpop.f32.mrf.mxu2  ;;  %v3940_v46 = vor.u32 %v4590_v39, %v3939_v38  ;;  %v4179_v21 = vor.u32 %v4648_v55, %v4176_v20  ;;  %v4174_v26 = vld [vmem:[%s6881_s10 + $0xa8] sm:$0xf]  ;;  %v4128_v38 = vld [vmem:[%s6881_s10 + $0x54] sm:$0xf0]  ;;  %v4671_v55 = vld [vmem:[%s6881_s10 + $0x160] sm:$0xf0] }
 0x169   :  { %2198 = vmatpush.bf16.msrb.mxu3 %v3688_v54 }
 0x16a   :  { %v1255_v47 = vpop.f32.mrf.mxu0  ;;  %2111 = vmatmul.bf16.vlgmr.msra.gmra.mxu0 %v6205_v50 }
 0x16b   :  { %v1256_v51 = vadd.f32 %v1255_v47, %v1243_v34  ;;  %2235 = vmatpush.bf16.msrb.mxu1 %v4000_v37  ;;  %2207 = vmatpush.bf16.msra.mxu0 %v3832_v48  ;;  %v4626_v34 = vld [vmem:[%s6859_s5 + $0x370] sm:$0xf0]  ;;  %v4551_v37 = vld [vmem:[%s6859_s5 + $0x118] sm:$0xf0]  ;;  %v3771_v48 = vld [vmem:[%s6859_s5 + $0xf8] sm:$0xf] }
 0x16c   :  { %v4084_v54 = vor.u32 %v4626_v34, %v4083_v41  ;;  %v3784_v35 = vor.u32 %v4551_v37, %v3783_v36  ;;  %v4623_v47 = vld [vmem:[%s6859_s5 + $0x358] sm:$0xf0]  ;;  %v4673_v36 = vld [vmem:[%s6881_s10 + $0x170] sm:$0xf0]  ;;  %v4636_v37 = vld [vmem:[%s6881_s10 + $0x4c] sm:$0xf] }
 0x16d   :  { %v1269_v62 = vadd.f32 %v1268_v17, %v1256_v51  ;;  %2199 = vmatpush.bf16.msrb.mxu3 %v3676_v58  ;;  %v3892_v51 = vor.u32 %v4578_v44, %v3891_v43  ;;  %v4072_v52 = vor.u32 %v4623_v47, %v4071_v45  ;;  %v4620_v58 = vld [vmem:[%s6859_s5 + $0x340] sm:$0xf0]  ;;  %v4646_v41 = vld [vmem:[%s6881_s10 + $0x98] sm:$0xf0]  ;;  %v4258_v44 = vld [vmem:[%s6881_s10 + $0x150] sm:$0xf] }
 0x16e   :  { %v4163_v34 = vor.u32 %v4646_v41, %v4162_v32  ;;  %v4643_v43 = vld [vmem:[%s6881_s10 + $0x80] sm:$0xf0]  ;;  %v4633_v47 = vld [vmem:[%s6881_s10 + $0x34] sm:$0xf]  ;;  %v4198_v41 = vld [vmem:[%s6881_s10 + $0xd8] sm:$0xf] }
 0x16f   :  { %vm1276_vm8 = vcmp.ge.f32.partialorder %v1269_v62, 0.0  ;;  %v1281_v6 = vmul.f32 10.0, %v1269_v62  ;;  %2236 = vmatpush.bf16.msrb.mxu1 %v3988_v53  ;;  %2208 = vmatpush.bf16.msra.mxu0 %v3820_v1  ;;  %v3772_v53 = vor.u32 %v4548_v49, %v3771_v48  ;;  %v3867_v1 = vld [vmem:[%s6859_s5 + $0x1b8] sm:$0xf]  ;;  %v4116_v48 = vld [vmem:[%s6881_s10 + $0x3c] sm:$0xf0] }
 0x170   :  { %v3868_v8 = vor.u32 %v4572_v2, %v3867_v1  ;;  %v4637_v1 = vld [vmem:[%s6881_s10 + $0x50] sm:$0xf0] }
 0x171   :  { %v1286_v19 = vsel %vm1276_vm8, %v1269_v62, %v1281_v6  ;;  %2200 = vmatpush.bf16.msrb.mxu3 %v3664_v12  ;;  %v3880_v62 = vor.u32 %v4575_v57, %v3879_v56  ;;  %v3747_v6 = vld [vmem:[%s6859_s5 + $0xc8] sm:$0xf]  ;;  %v4640_v56 = vld [vmem:[%s6881_s10 + $0x68] sm:$0xf0] }
 0x172   :  { %v6248_v16 = vpack.c.bf16 %v1286_v19, %v1286_v19  ;;  %v1257_v17 = vpop.f32.mrf.mxu0  ;;  %v4569_v19 = vld [vmem:[%s6859_s5 + $0x1a8] sm:$0xf0]  ;;  %v4035_v12 = vld [vmem:[%s6859_s5 + $0x308] sm:$0xf] }
 0x173   :  { %2237 = vmatpush.bf16.msrb.mxu1 %v3976_v7  ;;  %2209 = vmatpush.bf16.msra.mxu0 %v3808_v18  ;;  %v4542_v7 = vld [vmem:[%s6859_s5 + $0xd0] sm:$0xf0] }
 0x174   :  { %4085 = vmatmul.msk.bf16.vlgmr.msrb.gmra.mxu2 %vm2050_vm9, %v6248_v16  ;;  %4086 = vmatmul.msk.bf16.vlgmr.msra.gmra.mxu1 %vm2050_vm9, %v6248_v16  ;;  %v3748_v10 = vor.u32 %v4542_v7, %v3747_v6  ;;  %v4566_v17 = vld [vmem:[%s6859_s5 + $0x190] sm:$0xf0]  ;;  %v4627_v6 = vld [vmem:[%s6881_s10 + $0x4] sm:$0xf]  ;;  %v4235_v7 = vor.u32 %v4664_v5, %v4234_v4  ;;  %v4306_v4 = vld [vmem:[%s6881_s10 + $0x1b0] sm:$0xf] }
 0x175   :  { %2220 = vmatpush.bf16.msrb.mxu2 %v3928_v13  ;;  %2201 = vmatpush.bf16.msrb.mxu3 %v3652_v28  ;;  %v3856_v13 = vor.u32 %v4569_v19, %v3855_v11  ;;  %v3844_v18 = vor.u32 %v4566_v17, %v3843_v15  ;;  %v4649_v28 = vld [vmem:[%s6881_s10 + $0xb0] sm:$0xf0]  ;;  %v4682_v5 = vld [vmem:[%s6881_s10 + $0x1b8] sm:$0x30] }
 0x176   :  { %v4661_v17 = vld [vmem:[%s6881_s10 + $0x110] sm:$0xf0] }
 0x177   :  { %2238 = vmatpush.bf16.msrb.mxu1 %v3964_v22  ;;  %2210 = vmatpush.bf16.msra.mxu0 %v3796_v59  ;;  %v4140_v59 = vld [vmem:[%s6881_s10 + $0x6c] sm:$0xf0] }
 0x178   :  { %2202 = vmatmul.bf16.vlgmr.msrb.gmra.mxu3 %v6012_v42  ;;  %v4059_v42 = vld [vmem:[%s6859_s5 + $0x338] sm:$0xf] }
 0x179   :  { %2221 = vmatpush.bf16.msrb.mxu2 %v3916_v29  ;;  %2248 = vmatpush.bf16.msra.mxu3 %v2062_v30  ;;  %v4060_v63 = vor.u32 %v4620_v58, %v4059_v42  ;;  %v4175_v29 = vor.u32 %v4649_v28, %v4174_v26  ;;  %v4639_v30 = vld [vmem:[%s6881_s10 + $0x64] sm:$0xf]  ;;  %v4246_v42 = vld [vmem:[%s6881_s10 + $0x138] sm:$0xf]  ;;  %v4254_v26 = vld [vmem:[%s6881_s10 + $0x140] sm:$0xf] }
 0x17a   :  { %2163 = vmatmul.bf16.vlgmr.msrb.gmra.mxu0 %v6128_v3  ;;  %v4143_v31 = vor.u32 %v4639_v30, %v4140_v59  ;;  %v4667_v58 = vld [vmem:[%s6881_s10 + $0x140] sm:$0xf0]  ;;  %v4668_v28 = vld [vmem:[%s6881_s10 + $0x148] sm:$0xf0]  ;;  %v4090_v59 = vld [vmem:[%s6881_s10] sm:$0xf] }
 0x17b   :  { %2239 = vmatpush.bf16.msrb.mxu1 %v3952_v33  ;;  %2211 = vmatpush.bf16.msra.mxu0 %v3784_v35  ;;  %v4270_v33 = vld [vmem:[%s6881_s10 + $0x168] sm:$0xf]  ;;  %v4150_v35 = vld [vmem:[%s6881_s10 + $0x78] sm:$0xf]  ;;  %v4247_v61 = vor.u32 %v4667_v58, %v4246_v42  ;;  %v4659_v42 = vld [vmem:[%s6881_s10 + $0x100] sm:$0xf0] }
 0x17c   :  { %v4271_v39 = vor.u32 %v4673_v36, %v4270_v33  ;;  %v4151_v45 = vor.u32 %v4643_v43, %v4150_v35  ;;  %v4655_v33 = vld [vmem:[%s6881_s10 + $0xe0] sm:$0xf0]  ;;  %v4242_v36 = vld [vmem:[%s6881_s10 + $0x128] sm:$0xf]  ;;  %v4182_v43 = vld [vmem:[%s6881_s10 + $0xb0] sm:$0xf] }
 0x17d   :  { %2222 = vmatpush.bf16.msrb.mxu2 %v3904_v40  ;;  %2249 = vmatpush.bf16.msra.mxu3 %v4084_v54  ;;  %v4131_v40 = vor.u32 %v4636_v37, %v4128_v38  ;;  %v4665_v37 = vld [vmem:[%s6881_s10 + $0x130] sm:$0xf0] }
 0x17e   :  { %v4243_v38 = vor.u32 %v4665_v37, %v4242_v36 }
 0x17f   :  { %2240 = vmatpush.bf16.msrb.mxu1 %v3940_v46  ;;  %2212 = vmatpush.bf16.msra.mxu0 %v3772_v53  ;;  %v4670_v46 = vld [vmem:[%s6881_s10 + $0x158] sm:$0xf0]  ;;  %v4138_v53 = vld [vmem:[%s6881_s10 + $0x60] sm:$0xf] }
 0x180   :  { %v4259_v49 = vor.u32 %v4670_v46, %v4258_v44  ;;  %v4139_v57 = vor.u32 %v4640_v56, %v4138_v53  ;;  %v4650_v44 = vld [vmem:[%s6881_s10 + $0xb8] sm:$0xf0]  ;;  %v4647_v53 = vld [vmem:[%s6881_s10 + $0xa0] sm:$0xf0]  ;;  %v4218_v56 = vld [vmem:[%s6881_s10 + $0xf8] sm:$0xf] }
 0x181   :  { %2223 = vmatpush.bf16.msrb.mxu2 %v3892_v51  ;;  %2250 = vmatpush.bf16.msra.mxu3 %v4072_v52  ;;  %v4119_v51 = vor.u32 %v4633_v47, %v4116_v48  ;;  %v4183_v46 = vor.u32 %v4650_v44, %v4182_v43  ;;  %v4662_v47 = vld [vmem:[%s6881_s10 + $0x118] sm:$0xf0]  ;;  %v4219_v58 = vor.u32 %v4659_v42, %v4218_v56  ;;  %v4296_v56 = vld [vmem:[%s6881_s10 + $0x1a4] sm:$0xf0] }
 0x182   :  { %v4666_v42 = vld [vmem:[%s6881_s10 + $0x13c] sm:$0xf] }
 0x183   :  { %2213 = vmatpush.bf16.msra.mxu0 %v3760_v0  ;;  %v4126_v0 = vld [vmem:[%s6881_s10 + $0x48] sm:$0xf] }
 0x184   :  { %2176 = vmatmul.bf16.vlgmr.msra.gmra.mxu2 %v6205_v50  ;;  %2241 = vmatmul.bf16.vlgmr.msrb.gmra.mxu1 %v6205_v50  ;;  %v4614_v50 = vld [vmem:[%s6859_s5 + $0x310] sm:$0xf0]  ;;  %v4127_v2 = vor.u32 %v4637_v1, %v4126_v0  ;;  %v4206_v0 = vld [vmem:[%s6881_s10 + $0xe0] sm:$0xf] }
 0x185   :  { %2224 = vmatpush.bf16.msrb.mxu2 %v3880_v62  ;;  %2251 = vmatpush.bf16.msra.mxu3 %v4060_v63  ;;  %v4036_v14 = vor.u32 %v4614_v50, %v4035_v12  ;;  %v4104_v62 = vld [vmem:[%s6881_s10 + $0x24] sm:$0xf0]  ;;  %v4114_v50 = vld [vmem:[%s6881_s10 + $0x30] sm:$0xf] }
 0x186   :  { %v4107_v63 = vor.u32 %v4630_v60, %v4104_v62  ;;  %v4158_v62 = vld [vmem:[%s6881_s10 + $0x80] sm:$0xf] }
 0x187   :  { %2214 = vmatpush.bf16.msra.mxu0 %v3748_v10  ;;  %v4674_v10 = vld [vmem:[%s6881_s10 + $0x178] sm:$0xf0] }
 0x189   :  { %2225 = vmatpush.bf16.msrb.mxu2 %v3868_v8  ;;  %2252 = vmatpush.bf16.msra.mxu3 %v4048_v9  ;;  %v4092_v8 = vld [vmem:[%s6881_s10 + $0xc] sm:$0xf0] }
 0x18a   :  { %2215 = vmatmul.bf16.vlgmr.msra.gmra.mxu0 %v6076_v27  ;;  %v4645_v27 = vld [vmem:[%s6881_s10 + $0x94] sm:$0xf]  ;;  %v4278_v9 = vld [vmem:[%s6881_s10 + $0x170] sm:$0xf]  ;;  %v4095_v11 = vor.u32 %v4627_v6, %v4092_v8  ;;  %v4307_v8 = vor.u32 %v4682_v5, %v4306_v4  ;;  %v4675_v5 = vld [vmem:[%s6881_s10 + $0x184] sm:$0xf] }
 0x18b   :  { %2668 = vmatpush.bf16.msrb.mxu0 %v4175_v29  ;;  %v4279_v19 = vor.u32 %v4674_v10, %v4278_v9  ;;  %v4255_v29 = vor.u32 %v4668_v28, %v4254_v26  ;;  %v4672_v28 = vld [vmem:[%s6881_s10 + $0x16c] sm:$0xf] }
 0x18c   :  { %v2660_v10 = vsel %vm1061_vm0, %v4307_v8, 0 }
 0x18d   :  { %2226 = vmatpush.bf16.msrb.mxu2 %v3856_v13  ;;  %2253 = vmatpush.bf16.msra.mxu3 %v4036_v14  ;;  %v4634_v13 = vld [vmem:[%s6881_s10 + $0x38] sm:$0xf0]  ;;  %v4222_v14 = vld [vmem:[%s6881_s10 + $0x108] sm:$0xf] }
 0x18e   :  { %v4115_v15 = vor.u32 %v4634_v13, %v4114_v50  ;;  %v4223_v20 = vor.u32 %v4661_v17, %v4222_v14  ;;  %2699 = vmatpush.bf16.msra.mxu1 %v2660_v10  ;;  %v4194_v50 = vld [vmem:[%s6881_s10 + $0xc8] sm:$0xf]  ;;  %v4653_v13 = vld [vmem:[%s6881_s10 + $0xd0] sm:$0xf0]  ;;  %v4294_v14 = vld [vmem:[%s6881_s10 + $0x198] sm:$0xf] }
 0x18f   :  { %2669 = vmatpush.bf16.msrb.mxu0 %v4163_v34  ;;  %v4199_v34 = vor.u32 %v4655_v33, %v4198_v41  ;;  %v4195_v17 = vor.u32 %v4653_v13, %v4194_v50  ;;  %v4122_v41 = vld [vmem:[%s6881_s10 + $0x38] sm:$0xf] }
 0x190   :  { %4087 = vmatmul.msk.bf16.vlgmr.msra.gmra.mxu3 %vm2050_vm9, %v6248_v16  ;;  %v4164_v16 = vld [vmem:[%s6881_s10 + $0x9c] sm:$0xf0] }
 0x191   :  { %2227 = vmatpush.bf16.msrb.mxu2 %v3844_v18  ;;  %2707 = vmatpush.bf16.msrb.mxu3 %v4179_v21  ;;  %v4167_v22 = vor.u32 %v4645_v27, %v4164_v16  ;;  %v4266_v18 = vld [vmem:[%s6881_s10 + $0x158] sm:$0xf]  ;;  %v4631_v16 = vld [vmem:[%s6881_s10 + $0x20] sm:$0xf0] }
 0x192   :  { %v4267_v27 = vor.u32 %v4671_v55, %v4266_v18  ;;  %v4102_v21 = vld [vmem:[%s6881_s10 + $0x18] sm:$0xf]  ;;  %v4679_v18 = vld [vmem:[%s6881_s10 + $0x1a0] sm:$0xf0] }
 0x193   :  { %2670 = vmatpush.bf16.msrb.mxu0 %v4151_v45  ;;  %v4230_v45 = vld [vmem:[%s6881_s10 + $0x110] sm:$0xf]  ;;  %v4295_v55 = vor.u32 %v4679_v18, %v4294_v14  ;;  %v4660_v14 = vld [vmem:[%s6881_s10 + $0x10c] sm:$0xf]  ;;  %v4314_v18 = vld [vmem:[%s6881_s10 + $0x1b8] sm:$0xf] }
 0x194   :  { %2228 = vmatmul.bf16.vlgmr.msrb.gmra.mxu2 %v6128_v3  ;;  %v4642_v3 = vld [vmem:[%s6881_s10 + $0x7c] sm:$0xf] }
 0x195   :  { %2708 = vmatpush.bf16.msrb.mxu3 %v4167_v22  ;;  %v4155_v24 = vor.u32 %v4642_v3, %v4152_v23  ;;  %2681 = vmatpush.bf16.msra.mxu2 %v4271_v39  ;;  %v4103_v22 = vor.u32 %v4631_v16, %v4102_v21  ;;  %v4210_v3 = vld [vmem:[%s6881_s10 + $0xf0] sm:$0xf]  ;;  %v4658_v23 = vld [vmem:[%s6881_s10 + $0xf8] sm:$0xf0] }
 0x196   :  { %v4638_v21 = vld [vmem:[%s6881_s10 + $0x58] sm:$0xf0]  ;;  %2700 = vmatpush.bf16.msra.mxu1 %v4295_v55  ;;  %v4683_v55 = vld [vmem:[%s6881_s10 + $0x1c0] sm:$0x30] }
 0x197   :  { %2671 = vmatpush.bf16.msrb.mxu0 %v4139_v57 }
 0x199   :  { %2709 = vmatpush.bf16.msrb.mxu3 %v4155_v24  ;;  %2682 = vmatpush.bf16.msra.mxu2 %v4259_v49  ;;  %v4211_v24 = vor.u32 %v4658_v23, %v4210_v3  ;;  %v4231_v49 = vor.u32 %v4662_v47, %v4230_v45  ;;  %v4282_v3 = vld [vmem:[%s6881_s10 + $0x180] sm:$0xf] }
 0x19a   :  { %v4110_v45 = vld [vmem:[%s6881_s10 + $0x20] sm:$0xf] }
 0x19b   :  { %2672 = vmatpush.bf16.msrb.mxu0 %v4127_v2  ;;  %v4656_v2 = vld [vmem:[%s6881_s10 + $0xe8] sm:$0xf0] }
 0x19d   :  { %2710 = vmatpush.bf16.msrb.mxu3 %v4143_v31  ;;  %2683 = vmatpush.bf16.msra.mxu2 %v4247_v61  ;;  %v4628_v31 = vld [vmem:[%s6881_s10 + $0x8] sm:$0xf0]  ;;  %v6583_v61 = vld [vmem:[%s6882_s13] sm:$0x7] }
 0x19e   :  { %v4091_v32 = vor.u32 %v4628_v31, %v4090_v59  ;;  %v1444_v9 = vperm.slane %v6583_v61, 0 }
 0x19f   :  { %2673 = vmatpush.bf16.msrb.mxu0 %v4115_v15 }
 0x1a1   :  { %2711 = vmatpush.bf16.msrb.mxu3 %v4131_v40  ;;  %2684 = vmatpush.bf16.msra.mxu2 %v4235_v7  ;;  %v4186_v40 = vld [vmem:[%s6881_s10 + $0xc0] sm:$0xf]  ;;  %v4207_v7 = vor.u32 %v4656_v2, %v4206_v0  ;;  %v4629_v0 = vld [vmem:[%s6881_s10 + $0x10] sm:$0xf0] }
 0x1a3   :  { %2674 = vmatpush.bf16.msrb.mxu0 %v4103_v22 }
 0x1a5   :  { %2712 = vmatpush.bf16.msrb.mxu3 %v4119_v51  ;;  %2685 = vmatpush.bf16.msra.mxu2 %v4223_v20  ;;  %v4170_v51 = vld [vmem:[%s6881_s10 + $0x98] sm:$0xf] }
 0x1a6   :  { %v4171_v57 = vor.u32 %v4647_v53, %v4170_v51  ;;  %v4678_v53 = vld [vmem:[%s6881_s10 + $0x19c] sm:$0xf] }
 0x1a7   :  { %2675 = vmatpush.bf16.msrb.mxu0 %v4091_v32  ;;  %v4681_v32 = vld [vmem:[%s6881_s10 + $0x1b4] sm:$0xf] }
 0x1a9   :  { %2713 = vmatpush.bf16.msrb.mxu3 %v4107_v63  ;;  %2686 = vmatpush.bf16.msra.mxu2 %v4211_v24  ;;  %v4644_v63 = vld [vmem:[%s6881_s10 + $0x88] sm:$0xf0] }
 0x1aa   :  { %v4159_v1 = vor.u32 %v4644_v63, %v4158_v62  ;;  %v4098_v63 = vld [vmem:[%s6881_s10 + $0x8] sm:$0xf] }
 0x1ab   :  { %v4099_v4 = vor.u32 %v4629_v0, %v4098_v63  ;;  %v4690_v0 = vld [vmem:[%s6883_s17 + $0x30] sm:$0xff] }
 0x1ad   :  { %2714 = vmatpush.bf16.msrb.mxu3 %v4095_v11  ;;  %2687 = vmatpush.bf16.msra.mxu2 %v4199_v34  ;;  %v4146_v11 = vld [vmem:[%s6881_s10 + $0x68] sm:$0xf]  ;;  %v4635_v34 = vld [vmem:[%s6881_s10 + $0x40] sm:$0xf0] }
 0x1b1   :  { %2759 = vmatpush.bf16.msra.mxu3 %v4279_v19  ;;  %v4641_v19 = vld [vmem:[%s6881_s10 + $0x70] sm:$0xf0] }
 0x1b5   :  { %2760 = vmatpush.bf16.msra.mxu3 %v4267_v27  ;;  %v4134_v27 = vld [vmem:[%s6881_s10 + $0x50] sm:$0xf] }
 0x1b6   :  { %v4135_v22 = vor.u32 %v4638_v21, %v4134_v27  ;;  %v4315_v21 = vor.u32 %v4683_v55, %v4314_v18 }
 0x1b9   :  { %2761 = vmatpush.bf16.msra.mxu3 %v4255_v29  ;;  %v4272_v29 = vld [vmem:[%s6881_s10 + $0x174] sm:$0xf0] }
 0x1ba   :  { %v4275_v59 = vor.u32 %v4672_v28, %v4272_v29 }
 0x1bb   :  { %v6398_v25 = vpop.f32.mrf.mxu2 }
 0x1bc   :  { %v2074_v20 = vadd.f32 %v6398_v25, %v1444_v9  ;;  %v4676_v25 = vld [vmem:[%s6881_s10 + $0x188] sm:$0xf0] }
 0x1bd   :  { %2762 = vmatpush.bf16.msra.mxu3 %v4243_v38  ;;  %v4283_v26 = vor.u32 %v4676_v25, %v4282_v3  ;;  %v4123_v38 = vor.u32 %v4635_v34, %v4122_v41  ;;  %v4302_v3 = vld [vmem:[%s6881_s10 + $0x1a0] sm:$0xf]  ;;  %v4680_v25 = vld [vmem:[%s6881_s10 + $0x1a8] sm:$0xf0]  ;;  %v4677_v41 = vld [vmem:[%s6881_s10 + $0x190] sm:$0xf0] }
 0x1be   :  { %v4303_v29 = vor.u32 %v4680_v25, %v4302_v3  ;;  %v4700_v25 = vld [vmem:[%s6883_s17 + $0x80] sm:$0xff] }
 0x1bf   :  { %2701 = vmatpush.bf16.msra.mxu1 %v4283_v26 }
 0x1c1   :  { %2763 = vmatpush.bf16.msra.mxu3 %v4231_v49 }
 0x1c3   :  { %v2075_v54 = vpop.f32.mrf.mxu2  ;;  %2720 = vmatpush.bf16.msrb.mxu1 %v4275_v59  ;;  %v4654_v59 = vld [vmem:[%s6881_s10 + $0xdc] sm:$0xf] }
 0x1c4   :  { %v4652_v54 = vld [vmem:[%s6881_s10 + $0xc8] sm:$0xf0] }
 0x1c5   :  { %v4187_v35 = vor.u32 %v4652_v54, %v4186_v40  ;;  %2764 = vmatpush.bf16.msra.mxu3 %v4219_v58  ;;  %v4260_v40 = vld [vmem:[%s6881_s10 + $0x15c] sm:$0xf0]  ;;  %v4248_v58 = vld [vmem:[%s6881_s10 + $0x144] sm:$0xf0] }
 0x1c6   :  { %v4251_v62 = vor.u32 %v4666_v42, %v4248_v58 }
 0x1c7   :  { %v6448_v52 = vpop.f32.mrf.mxu1  ;;  %2688 = vmatpush.bf16.msra.mxu2 %v4187_v35 }
 0x1c8   :  { %v2087_v23 = vadd.f32 %v6448_v52, %v2074_v20  ;;  %v4308_v52 = vld [vmem:[%s6881_s10 + $0x1bc] sm:$0x30] }
 0x1c9   :  { %2765 = vmatpush.bf16.msra.mxu3 %v4207_v7  ;;  %v4311_v33 = vor.u32 %v4681_v32, %v4308_v52  ;;  %v4663_v7 = vld [vmem:[%s6881_s10 + $0x124] sm:$0xf]  ;;  %v4290_v52 = vld [vmem:[%s6881_s10 + $0x188] sm:$0xf] }
 0x1cb   :  { %2746 = vmatpush.bf16.msrb.mxu2 %v4183_v46  ;;  %v2663_v35 = vsel %vm1061_vm0, %v4311_v33, 0  ;;  %v4632_v46 = vld [vmem:[%s6881_s10 + $0x28] sm:$0xf0] }
 0x1cc   :  { %2738 = vmatpush.bf16.msra.mxu0 %v2663_v35 }
 0x1cd   :  { %2766 = vmatpush.bf16.msra.mxu3 %v4195_v17  ;;  %v4224_v17 = vld [vmem:[%s6881_s10 + $0x114] sm:$0xf0] }
 0x1ce   :  { %v4227_v20 = vor.u32 %v4660_v14, %v4224_v17  ;;  %v4702_v14 = vld [vmem:[%s6883_s17 + $0x90] sm:$0x30]  ;;  %v4695_v17 = vld [vmem:[%s6883_s17 + $0x58] sm:$0xff] }
 0x1cf   :  { %v2088_v12 = vpop.f32.mrf.mxu1  ;;  %2747 = vmatpush.bf16.msrb.mxu2 %v4171_v57  ;;  %v4299_v57 = vor.u32 %v4678_v53, %v4296_v56 }
 0x1d0   :  { %v4147_v12 = vor.u32 %v4641_v19, %v4146_v11  ;;  %v4236_v11 = vld [vmem:[%s6881_s10 + $0x12c] sm:$0xf0] }
 0x1d1   :  { %2739 = vmatpush.bf16.msra.mxu0 %v4299_v57  ;;  %v4239_v19 = vor.u32 %v4663_v7, %v4236_v11  ;;  %v4686_v7 = vld [vmem:[%s6883_s17 + $0x10] sm:$0xff]  ;;  %v4697_v11 = vld [vmem:[%s6883_s17 + $0x68] sm:$0xff] }
 0x1d3   :  { %2748 = vmatpush.bf16.msrb.mxu2 %v4159_v1  ;;  %v1445_v1 = vperm.slane %v6583_v61, 1 }
 0x1d7   :  { %v6528_v30 = vpop.f32.mrf.mxu1  ;;  %2749 = vmatpush.bf16.msrb.mxu2 %v4147_v12 }
 0x1d8   :  { %v2139_v50 = vadd.f32 %v6528_v30, %v1445_v1  ;;  %v4657_v30 = vld [vmem:[%s6881_s10 + $0xf4] sm:$0xf]  ;;  %v4689_v1 = vld [vmem:[%s6883_s17 + $0x28] sm:$0xff] }
 0x1db   :  { %v6548_v39 = vpop.f32.mrf.mxu3  ;;  %2750 = vmatpush.bf16.msrb.mxu2 %v4135_v22  ;;  %v4212_v22 = vld [vmem:[%s6881_s10 + $0xfc] sm:$0xf0] }
 0x1dc   :  { %v2100_v31 = vadd.f32 %v6548_v39, %v2087_v23  ;;  %v4669_v39 = vld [vmem:[%s6881_s10 + $0x154] sm:$0xf]  ;;  %v4215_v26 = vor.u32 %v4657_v30, %v4212_v22  ;;  %v4701_v30 = vld [vmem:[%s6883_s17 + $0x88] sm:$0xff] }
 0x1dd   :  { %v4263_v43 = vor.u32 %v4669_v39, %v4260_v40  ;;  %v4651_v39 = vld [vmem:[%s6881_s10 + $0xc4] sm:$0xf]  ;;  %v4188_v40 = vld [vmem:[%s6881_s10 + $0xcc] sm:$0xf0] }
 0x1df   :  { %v2140_v48 = vpop.f32.mrf.mxu1  ;;  %2751 = vmatpush.bf16.msrb.mxu2 %v4123_v38  ;;  %2721 = vmatpush.bf16.msrb.mxu1 %v4263_v43  ;;  %v4291_v38 = vor.u32 %v4677_v41, %v4290_v52  ;;  %v4191_v43 = vor.u32 %v4651_v39, %v4188_v40 }
 0x1e0   :  { %v4111_v48 = vor.u32 %v4632_v46, %v4110_v45  ;;  %v1446_v45 = vperm.slane %v6583_v61, 2  ;;  %v4691_v61 = vld [vmem:[%s6883_s17 + $0x38] sm:$0xff] }
 0x1e3   :  { %v2101_v60 = vpop.f32.mrf.mxu3  ;;  %2752 = vmatpush.bf16.msrb.mxu2 %v4111_v48  ;;  %2722 = vmatpush.bf16.msrb.mxu1 %v4251_v62 }
 0x1e7   :  { %v2112_v6 = vpop.f32.mrf.mxu0  ;;  %2753 = vmatpush.bf16.msrb.mxu2 %v4099_v4  ;;  %2723 = vmatpush.bf16.msrb.mxu1 %v4239_v19  ;;  %v4699_v4 = vld [vmem:[%s6883_s17 + $0x78] sm:$0xff] }
 0x1e8   :  { %v2113_v36 = vadd.f32 %v2112_v6, %v2100_v31  ;;  %v4284_v6 = vld [vmem:[%s6881_s10 + $0x18c] sm:$0xf0]  ;;  %v4200_v31 = vld [vmem:[%s6881_s10 + $0xe4] sm:$0xf0] }
 0x1e9   :  { %v4287_v10 = vor.u32 %v4675_v5, %v4284_v6  ;;  %v4687_v5 = vld [vmem:[%s6883_s17 + $0x18] sm:$0xff] }
 0x1eb   :  { %v6620_v15 = vpop.f32.mrf.mxu3  ;;  %2740 = vmatpush.bf16.msra.mxu0 %v4287_v10  ;;  %2724 = vmatpush.bf16.msrb.mxu1 %v4227_v20 }
 0x1ec   :  { %v2152_v27 = vadd.f32 %v6620_v15, %v2139_v50  ;;  %v4696_v50 = vld [vmem:[%s6883_s17 + $0x60] sm:$0xff] }
 0x1ef   :  { %v2114_v24 = vpop.f32.mrf.mxu0  ;;  %2725 = vmatpush.bf16.msrb.mxu1 %v4215_v26 }
 0x1f0   :  { %v2666_v24 = vsel %vm1061_vm0, %v4315_v21, 0  ;;  %v4693_v21 = vld [vmem:[%s6883_s17 + $0x48] sm:$0xff] }
 0x1f1   :  { %v6632_v16 = vpop.f32.mrf.mxu1 }
 0x1f3   :  { %v2153_v37 = vpop.f32.mrf.mxu3 }
 0x1f4   :  { %v4203_v37 = vor.u32 %v4654_v59, %v4200_v31 }
 0x1f6   :  { %2726 = vmatpush.bf16.msrb.mxu1 %v4203_v37 }
 0x1f7   :  { %v2125_v54 = vpop.f32.mrf.mxu2  ;;  %v2164_v51 = vpop.f32.mrf.mxu0 }
 0x1f8   :  { %v2126_v44 = vadd.f32 %v2125_v54, %v2113_v36  ;;  %v2165_v23 = vadd.f32 %v2164_v51, %v2152_v27  ;;  %v4694_v27 = vld [vmem:[%s6883_s17 + $0x50] sm:$0xff] }
 0x1f9   :  { %v2192_v47 = vpop.f32.mrf.mxu1 }
 0x1fa   :  { %vm2259_vm10 = vcmp.ge.f32.partialorder %v2126_v44, 0.0  ;;  %v2262_v49 = vmul.f32 10.0, %v2126_v44  ;;  %2727 = vmatpush.bf16.msrb.mxu1 %v4191_v43 }
 0x1fb   :  { %v2203_v9 = vpop.f32.mrf.mxu3 }
 0x1fc   :  { %v2265_v60 = vsel %vm2259_vm10, %v2126_v44, %v2262_v49  ;;  %v2204_v47 = vadd.f32 %v2203_v9, %v1446_v45  ;;  %v4685_v9 = vld [vmem:[%s6883_s17 + $0x8] sm:$0xff] }
 0x1fd   :  { %v6692_v2 = vpack.c.bf16 %v2265_v60, %v2265_v60 }
 0x1ff   :  { %v2127_v8 = vpop.f32.mrf.mxu2  ;;  %2676 = vmatmul.bf16.vlgmr.msrb.gmra.mxu0 %v6692_v2  ;;  %2715 = vmatmul.bf16.vlgmr.msrb.gmra.mxu3 %v6692_v2  ;;  %v2166_v13 = vpop.f32.mrf.mxu0 }
 0x200   :  { %2777 = vmatpush.bf16.msrb.mxu0 %v2666_v24  ;;  %v4698_v8 = vld [vmem:[%s6883_s17 + $0x70] sm:$0xff]  ;;  %v4692_v24 = vld [vmem:[%s6883_s17 + $0x40] sm:$0xff] }
 0x201   :  { %v2242_v12 = vpop.f32.mrf.mxu1  ;;  %v4393_v13 = vld [vmem:[%s6883_s17 + $0x90] sm:$0xf] }
 0x202   :  { %v4394_v18 = vor.u32 %v4702_v14, %v4393_v13 }
 0x203   :  { %v2205_v15 = vpop.f32.mrf.mxu3 }
 0x204   :  { %2778 = vmatpush.bf16.msrb.mxu0 %v4303_v29  ;;  %v2956_v20 = vsel %vm1061_vm0, %v4394_v18, 0  ;;  %vm3061_vm0 = vcmask 1041408  }
 0x207   :  { %v2177_v28 = vpop.f32.mrf.mxu2  ;;  %v2216_v36 = vpop.f32.mrf.mxu0 }
 0x208   :  { %v2178_v32 = vadd.f32 %v2177_v28, %v2165_v23  ;;  %2779 = vmatpush.bf16.msrb.mxu0 %v4291_v38  ;;  %v2217_v49 = vadd.f32 %v2216_v36, %v2204_v47  ;;  %v2347_v23 = vld [vmem:[%s6884_s1] sm:$0x7] }
 0x209   :  { %v2244_v33 = vpop.f32.mrf.mxu1  ;;  %v2349_v26 = vperm.slane %v2347_v23, 0  ;;  %v2351_v37 = vperm.slane %v2347_v23, 2  ;;  %v2350_v40 = vperm.slane %v2347_v23, 1 }
 0x20a   :  { %v2191_v34 = vadd.f32 %v6632_v16, %v2178_v32 }
 0x20c   :  { %vm2260_vm11 = vcmp.ge.f32.partialorder %v2191_v34, 0.0  ;;  %v2263_v54 = vmul.f32 10.0, %v2191_v34 }
 0x20e   :  { %v2266_v35 = vsel %vm2260_vm11, %v2191_v34, %v2263_v54 }
 0x20f   :  { %v2269_v44 = vpack.c.bf16 %v2266_v35, %v2266_v35  ;;  %v2179_v16 = vpop.f32.mrf.mxu2  ;;  %v2218_v46 = vpop.f32.mrf.mxu0 }
 0x211   :  { %2689 = vmatmul.bf16.vlgmr.msra.gmra.mxu2 %v2269_v44  ;;  %2767 = vmatmul.bf16.vlgmr.msra.gmra.mxu3 %v2269_v44 }
 0x212   :  { %2989 = vmatpush.bf16.msra.mxu2 %v2956_v20 }
 0x213   :  { %v2255_v48 = vpop.f32.mrf.mxu3 }
 0x216   :  { %2990 = vmatpush.bf16.msra.mxu2 %v4701_v30  ;;  %v4713_v30 = vld [vmem:[%s6887_s29] ss:$0 sm:$0xff] }
 0x217   :  { %v2229_v51 = vpop.f32.mrf.mxu2 }
 0x218   :  { %v2230_v53 = vadd.f32 %v2229_v51, %v2217_v49 }
 0x21a   :  { %v2243_v56 = vadd.f32 %v2242_v12, %v2230_v53  ;;  %v4684_v12 = vld [vmem:[%s6883_s17] sm:$0xff]  ;;  %2991 = vmatpush.bf16.msra.mxu2 %v4700_v25 }
 0x21b   :  { %v2257_v42 = vpop.f32.mrf.mxu3 }
 0x21c   :  { %v2256_v57 = vadd.f32 %v2255_v48, %v2243_v56 }
 0x21e   :  { %vm2261_vm12 = vcmp.ge.f32.partialorder %v2256_v57, 0.0  ;;  %v2264_v58 = vmul.f32 10.0, %v2256_v57 }
 0x21f   :  { %v2231_v60 = vpop.f32.mrf.mxu2 }
 0x220   :  { %v2267_v62 = vsel %vm2261_vm12, %v2256_v57, %v2264_v58 }
 0x221   :  { %v2270_v63 = vpack.c.bf16 %v2267_v62, %v2267_v62  ;;  %2754 = vmatmul.bf16.vlgmr.msrb.gmra.mxu2 %v6692_v2  ;;  %v4688_v2 = vld [vmem:[%s6883_s17 + $0x20] sm:$0xff]  ;;  %v3013_v62 = vld [vmem:[%s6885_s8 + $0x30] sm:$0x3] }
 0x223   :  { %4316 = vmatmul.msk.bf16.vlgmr.msra.gmra.mxu1 %vm1057_vm2, %v2270_v63  ;;  %4317 = vmatmul.msk.bf16.vlgmr.msra.gmra.mxu0 %vm1057_vm2, %v2270_v63 }
 0x224   :  { %2958 = vmatpush.bf16.msra.mxu1 %v4691_v61  ;;  %2971 = vmatpush.bf16.msra.mxu0 %v4699_v4  ;;  %v4706_v4 = vld [vmem:[%s6885_s8 + $0x18] sm:$0xff] }
 0x228   :  { %2959 = vmatpush.bf16.msra.mxu1 %v4690_v0  ;;  %2972 = vmatpush.bf16.msra.mxu0 %v4698_v8 }
 0x22c   :  { %2960 = vmatpush.bf16.msra.mxu1 %v4689_v1  ;;  %2973 = vmatpush.bf16.msra.mxu0 %v4697_v11  ;;  %v4708_v1 = vld [vmem:[%s6885_s8 + $0x28] sm:$0xff] }
 0x230   :  { %2961 = vmatpush.bf16.msra.mxu1 %v4688_v2  ;;  %2974 = vmatpush.bf16.msra.mxu0 %v4696_v50  ;;  %v4707_v2 = vld [vmem:[%s6885_s8 + $0x20] sm:$0xff] }
 0x233   :  { %2728 = vmatmul.bf16.vlgmr.msrb.gmra.mxu1 %v2269_v44  ;;  %4318 = vmatmul.msk.bf16.vlgmr.msrb.gmra.mxu0 %vm1057_vm2, %v2270_v63  ;;  %v3043_v63 = vunpack.c.l.b16 %v3013_v62 }
 0x234   :  { %2962 = vmatpush.bf16.msra.mxu1 %v4687_v5  ;;  %2975 = vmatpush.bf16.msra.mxu0 %v4695_v17  ;;  %v4705_v5 = vld [vmem:[%s6885_s8 + $0x10] sm:$0xff] }
 0x235   :  { %v3050_v61 = vpack.c.b16 %v3043_v63, %v3043_v63 }
 0x237   :  { %v3063_v0 = vsel %vm3061_vm0, %v3050_v61, 0 }
 0x238   :  { %2963 = vmatpush.bf16.msra.mxu1 %v4686_v7  ;;  %2976 = vmatpush.bf16.msra.mxu0 %v4694_v27  ;;  %v4703_v7 = vld [vmem:[%s6885_s8] sm:$0xff] }
 0x239   :  { %3066 = vmatpush.bf16.msrb.mxu3 %v3063_v0 }
 0x23c   :  { %2964 = vmatpush.bf16.msra.mxu1 %v4685_v9  ;;  %2977 = vmatpush.bf16.msra.mxu0 %v4693_v21 }
 0x23d   :  { %3067 = vmatpush.bf16.msrb.mxu3 %v4708_v1 }
 0x240   :  { %2965 = vmatpush.bf16.msra.mxu1 %v4684_v12  ;;  %2978 = vmatpush.bf16.msra.mxu0 %v4692_v24 }
 0x241   :  { %3068 = vmatpush.bf16.msrb.mxu3 %v4707_v2 }
 0x245   :  { %3069 = vmatpush.bf16.msrb.mxu3 %v4706_v4 }
 0x249   :  { %3070 = vmatpush.bf16.msrb.mxu3 %v4705_v5 }
 0x27c   :  { %v2677_v6 = vpop.f32.mrf.mxu0 }
 0x27d   :  { %v2678_v29 = vadd.f32 %v2677_v6, %v2349_v26  ;;  %v4704_v6 = vld [vmem:[%s6885_s8 + $0x8] sm:$0xff] }
 0x27e   :  { %3071 = vmatpush.bf16.msrb.mxu3 %v4704_v6 }
 0x282   :  { %v2716_v10 = vpop.f32.mrf.mxu3  ;;  %3072 = vmatpush.bf16.msrb.mxu3 %v4703_v7 }
 0x283   :  { %v2717_v43 = vadd.f32 %v2716_v10, %v2350_v40  ;;  %v4712_v10 = vld [vmem:[%s6886_s3] ss:$0 sm:$0xff] }
 0x284   :  { %v2679_v19 = vpop.f32.mrf.mxu0 }
 0x28a   :  { %v2718_v55 = vpop.f32.mrf.mxu3 }
 0x294   :  { %v2690_v22 = vpop.f32.mrf.mxu2  ;;  %v2768_v3 = vpop.f32.mrf.mxu3 }
 0x295   :  { %v2691_v59 = vadd.f32 %v2690_v22, %v2678_v29 }
 0x29c   :  { %v2692_v28 = vpop.f32.mrf.mxu2  ;;  %v2770_v15 = vpop.f32.mrf.mxu3 }
 0x2a0   :  { %v2703_v31 = vpop.f32.mrf.mxu1  ;;  %v2742_v32 = vpop.f32.mrf.mxu0 }
 0x2a1   :  { %v2704_v52 = vadd.f32 %v2703_v31, %v2691_v59 }
 0x2a3   :  { %vm2785_vm13 = vcmp.ge.f32.partialorder %v2704_v52, 0.0  ;;  %v2788_v41 = vmul.f32 10.0, %v2704_v52 }
 0x2a4   :  { %v2755_v33 = vpop.f32.mrf.mxu2 }
 0x2a5   :  { %v2791_v34 = vsel %vm2785_vm13, %v2704_v52, %v2788_v41  ;;  %v2756_v54 = vadd.f32 %v2755_v33, %v2351_v37 }
 0x2a6   :  { %v2794_v36 = vpack.c.bf16 %v2791_v34, %v2791_v34 }
 0x2a7   :  { %v2769_v44 = vadd.f32 %v2768_v3, %v2756_v54 }
 0x2a8   :  { %v2705_v38 = vpop.f32.mrf.mxu1  ;;  %v2744_v39 = vpop.f32.mrf.mxu0  ;;  %2966 = vmatmul.bf16.vlgmr.msra.gmra.mxu1 %v2794_v36 }
 0x2ac   :  { %v2757_v35 = vpop.f32.mrf.mxu2 }
 0x2b0   :  { %v2729_v16 = vpop.f32.mrf.mxu1  ;;  %v2781_v45 = vpop.f32.mrf.mxu0 }
 0x2b1   :  { %v2730_v46 = vadd.f32 %v2729_v16, %v2717_v43  ;;  %v2782_v47 = vadd.f32 %v2781_v45, %v2769_v44 }
 0x2b3   :  { %v2743_v48 = vadd.f32 %v2742_v32, %v2730_v46  ;;  %vm2787_vm14 = vcmp.ge.f32.partialorder %v2782_v47, 0.0  ;;  %v2790_v49 = vmul.f32 10.0, %v2782_v47 }
 0x2b5   :  { %vm2786_vm15 = vcmp.ge.f32.partialorder %v2743_v48, 0.0  ;;  %v2789_v51 = vmul.f32 10.0, %v2743_v48  ;;  %v2793_v53 = vsel %vm2787_vm14, %v2782_v47, %v2790_v49 }
 0x2b6   :  { %v2796_v56 = vpack.c.bf16 %v2793_v53, %v2793_v53 }
 0x2b7   :  { %v2792_v57 = vsel %vm2786_vm15, %v2743_v48, %v2789_v51 }
 0x2b8   :  { %v2795_v42 = vpack.c.bf16 %v2792_v57, %v2792_v57  ;;  %v2731_v58 = vpop.f32.mrf.mxu1  ;;  %v2783_v60 = vpop.f32.mrf.mxu0  ;;  %4395 = vmatmul.msk.bf16.vlgmr.msra.gmra.mxu2 %vm1057_vm2, %v2796_v56  ;;  %vm3057_vm2 = vcmask 818176  }
 0x2ba   :  { %2979 = vmatmul.bf16.vlgmr.msra.gmra.mxu0 %v2795_v42 }
 0x325   :  { %v2967_v8 = vpop.f32.mrf.mxu1 }
 0x326   :  { %v2968_v19 = vadd.f32 %v4712_v10, %v2967_v8 }
 0x32d   :  { %v2969_v9 = vpop.f32.mrf.mxu1 }
 0x337   :  { %v2980_v11 = vpop.f32.mrf.mxu0 }
 0x338   :  { %v2981_v12 = vadd.f32 %v2980_v11, %v2968_v19 }
 0x33b   :  { %v2993_v50 = vpop.f32.mrf.mxu2 }
 0x33c   :  { %v2994_v13 = vadd.f32 %v2993_v50, %v2981_v12 }
 0x33e   :  { %vm2997_vm1 = vcmp.ge.f32.partialorder %v2994_v13, 0.0  ;;  %v2998_v14 = vmul.f32 10.0, %v2994_v13 }
 0x33f   :  { %v2982_v17 = vpop.f32.mrf.mxu0 }
 0x340   :  { %v2999_v18 = vsel %vm2997_vm1, %v2994_v13, %v2998_v14 }
 0x341   :  { %v3000_v55 = vpack.c.bf16 %v2999_v18, %v2999_v18 }
 0x343   :  { %v2995_v20 = vpop.f32.mrf.mxu2  ;;  %4420 = vmatmul.msk.bf16.vlgmr.msrb.gmra.mxu3 %vm3057_vm2, %v3000_v55 }
 0x3c6   :  { %v3074_v27 = vpop.f32.mrf.mxu3 }
 0x3c7   :  { %v3075_v21 = vadd.f32 %v4713_v30, %v3074_v27 }
 0x3c9   :  { %3079 = vst.msk [vmem:[#allocation8] sm:$0x3] %vm3078_vm3, %v3075_v21 }
 0x3ca   :  { %3090 = dma.vmem_to_hbm [thread:$0]  %s3086_s7, 32, %s3088_s6, [#allocation4]  }
 0x3ce   :  { %v3076_v22 = vpop.f32.mrf.mxu3 }
 0x3cf   :  { %4766 = dma.done.wait [#allocation4], 32  }
 0x3d0   :  { %4767 = vsyncadd [#allocation4], 4294967264 }
 0x3d1   :  { %3095 = vsyncpa [#allocation4], 1 }
 0x3d2   :  { %3096 = vsyncpa [#allocation5], 1 }
 0x3d3   :  { %3097 = vsyncpa [#allocation7], 1 }

</bundles_post_ra>
